<compile_context>
chip_gen: v6e
topology: v6e:2x2x1
jax: 0.10.0
libtpu: 0.0.40
codegen_flags: <defaults>
</compile_context>

<pallas_src>
import functools

import numpy as np
import jax
import jax.numpy as jnp
from jax.experimental import pallas as pl
from jax.experimental.pallas import tpu as pltpu


def _align(n, a):
  return ((n + a - 1) // a) * a


# ----------------------------------------------------------------------------------
# Fused forward kernel: encoder -> BN -> z heads -> reparam -> latent -> decoder
# ----------------------------------------------------------------------------------
def _cvae2_kernel(data_ref, w_ref, b_ref, ppt_ref, z_out_ref, rec_out_ref, *,
                  e0, e1, e2, e5, e6, L, inv_n, offs):
  f32 = jnp.float32

  def mm(x, w):
    # bf16 operands on the MXU, f32 accumulation.
    return jnp.dot(x.astype(jnp.bfloat16), w, preferred_element_type=f32)

  # Static carve-up of the single bf16 weight slab (row offsets are 16-aligned).
  o = offs
  w_c1  = w_ref[o["c1"]:o["c1"] + e0, 0:e1]        # conv1 (dense linearization)
  w_c2  = w_ref[o["c2"]:o["c2"] + e1, 0:e2]        # conv2
  w_zmv = w_ref[o["zmv"]:o["zmv"] + e2, 0:2 * L]   # z_mean | z_log_var heads
  w_l1  = w_ref[o["l1"]:o["l1"] + L, 0:L]          # linear1 (block cols [:n1])
  w_l2  = w_ref[o["l2"]:o["l2"] + L, 0:L]          # linear2 (block cols [n1:])
  w_dec = w_ref[o["dec"]:o["dec"] + L, 0:e2]       # decode_linear (view order folded)
  w_d2  = w_ref[o["d2"]:o["d2"] + e2, 0:e5]        # decode_2 ConvTranspose (dense)
  w_d1  = w_ref[o["d1"]:o["d1"] + e5, 0:e6]        # decode_1 ConvTranspose (dense)

  x    = data_ref[:, 0:e0]                         # (B, H0*W0*Cin)
  eps  = data_ref[:, e0:e0 + L]                    # (B, L)
  yemb = data_ref[:, e0 + L:e0 + 2 * L]            # (B, L)

  # ------------------------------- encoder -------------------------------
  a1 = jnp.maximum(mm(x, w_c1) + b_ref[0:1, 0:e1], 0.0)          # Conv1 + ReLU
  a2 = mm(a1, w_c2) + b_ref[1:2, 0:e2]                           # Conv2

  # BatchNorm2d: training-mode batch statistics (biased variance, eps=1e-5) + ReLU.
  # Statistics path kept in f32; row-reduce first (VPU), then the tiny per-channel
  # projection (ppt) -- two-pass centered variance avoids cancellation.
  rs = jnp.sum(a2, axis=0, keepdims=True)
  mean = jnp.dot(rs, ppt_ref[...], preferred_element_type=f32) * inv_n
  cent = a2 - mean
  var = jnp.dot(jnp.sum(cent * cent, axis=0, keepdims=True), ppt_ref[...],
                preferred_element_type=f32) * inv_n
  a2 = cent * jax.lax.rsqrt(var + 1e-5)
  a2 = jnp.maximum(a2 * b_ref[2:3, 0:e2] + b_ref[3:4, 0:e2], 0.0)

  # z_mean and softplus(z_log_var) from ONE matmul, stored as ONE (B, 2L) block.
  zmv = mm(a2, w_zmv) + b_ref[4:5, 0:2 * L]
  lane = jax.lax.broadcasted_iota(jnp.int32, zmv.shape, 1)
  zout = jnp.where(lane < L, zmv, jnp.logaddexp(zmv, 0.0))       # softplus on 2nd half
  z_out_ref[...] = zout
  z_mean = zmv[:, 0:L]
  z_log_var = zout[:, L:2 * L]

  # ------------------------------- latent --------------------------------
  # reparameterize, then z = sigmoid(concat(linear1(z_sample), linear2(y_emb))).
  # The concat is realized with block-column weights (no in-kernel lane concat).
  z_sample = z_mean + jnp.exp(0.5 * z_log_var) * eps
  z = jax.nn.sigmoid(mm(z_sample, w_l1) + mm(yemb, w_l2) + b_ref[5:6, 0:L])

  # ------------------------------- decoder -------------------------------
  d0 = mm(z, w_dec) + b_ref[6:7, 0:e2]                           # decode_linear
  d2 = jnp.maximum(mm(d0, w_d2) + b_ref[7:8, 0:e5], 0.0)         # deconv2 + ReLU
  rec_out_ref[...] = jax.nn.sigmoid(mm(d2, w_d1) + b_ref[8:9, 0:e6])  # deconv1 + sigmoid


# ----------------------------------------------------------------------------------
# One-time (NumPy) folding of the PyTorch-layout parameters into kernel constants
# ----------------------------------------------------------------------------------
def _dense_conv(w, b, H, W, stride, pad):
  """Conv2d (weight (O,C,k,k)) -> exact dense matrix (H*W*C, Ho*Wo*O), lanes (h,w,c)."""
  O, C, k, _ = w.shape
  Ho = (H + 2 * pad - k) // stride + 1
  Wo = (W + 2 * pad - k) // stride + 1
  M = np.zeros((H * W * C, Ho * Wo * O), np.float32)
  for ho in range(Ho):
    for kh in range(k):
      hi = stride * ho + kh - pad
      if not (0 <= hi < H):
        continue
      for wo in range(Wo):
        for kw in range(k):
          wi = stride * wo + kw - pad
          if not (0 <= wi < W):
            continue
          r0 = (hi * W + wi) * C
          c0 = (ho * Wo + wo) * O
          M[r0:r0 + C, c0:c0 + O] += w[:, :, kh, kw].T
  brow = np.tile(np.asarray(b, np.float32), Ho * Wo)
  return M, brow, Ho, Wo


def _dense_deconv(w, b, H, W, stride, pad):
  """ConvTranspose2d (weight (Cin,Cout,k,k)) -> exact dense matrix, lanes (h,w,c).
  Stride zero-insertion and padding are folded in; no upsampled buffer at run time."""
  C, O, k, _ = w.shape
  Ho = (H - 1) * stride - 2 * pad + k
  Wo = (W - 1) * stride - 2 * pad + k
  M = np.zeros((H * W * C, Ho * Wo * O), np.float32)
  for hi in range(H):
    for kh in range(k):
      ho = stride * hi + kh - pad
      if not (0 <= ho < Ho):
        continue
      for wi in range(W):
        for kw in range(k):
          wo = stride * wi + kw - pad
          if not (0 <= wo < Wo):
            continue
          r0 = (hi * W + wi) * C
          c0 = (ho * Wo + wo) * O
          M[r0:r0 + C, c0:c0 + O] += w[:, :, kh, kw]
  brow = np.tile(np.asarray(b, np.float32), Ho * Wo)
  return M, brow, Ho, Wo


def prepare_params(params, batch, input_size):
  """Fold PyTorch-layout parameters into the consolidated slabs the kernel consumes."""
  f32 = np.float32
  w_c1 = np.asarray(params["conv1_w"], f32); b_c1 = np.asarray(params["conv1_b"], f32)
  w_c2 = np.asarray(params["conv2_w"], f32); b_c2 = np.asarray(params["conv2_b"], f32)
  Cin = w_c1.shape[1]
  C1 = w_c1.shape[0]
  C2 = w_c2.shape[0]
  H0 = W0 = input_size

  Wc1, b1row, H1, W1 = _dense_conv(w_c1, b_c1, H0, W0, 2, 1)
  Wc2, b2row, H2, W2 = _dense_conv(w_c2, b_c2, H1, W1, 2, 1)
  e0 = H0 * W0 * Cin
  e1 = H1 * W1 * C1
  e2 = H2 * W2 * C2

  # BatchNorm helpers: per-lane (=per-channel, c innermost) affine rows and the
  # same-channel column projection used for the batch statistics.
  gamma_row = np.tile(np.asarray(params["bn_g"], f32), H2 * W2)
  beta_row = np.tile(np.asarray(params["bn_b"], f32), H2 * W2)
  idx = np.arange(e2)
  ppt = (idx[:, None] % C2 == idx[None, :] % C2).astype(f32)

  # z_mean / z_log_var heads with PyTorch's x.view(B,-1) NCHW flatten order folded in.
  wzm = np.asarray(params["zm_w"], f32)      # (L, C2*H2*W2)  torch Linear layout
  wzv = np.asarray(params["zv_w"], f32)
  L = wzm.shape[0]
  Wzmv = np.zeros((e2, 2 * L), f32)
  for h in range(H2):
    for w in range(W2):
      for c in range(C2):
        lane = (h * W2 + w) * C2 + c
        tidx = c * H2 * W2 + h * W2 + w
        Wzmv[lane, :L] = wzm[:, tidx]
        Wzmv[lane, L:] = wzv[:, tidx]
  bzmv = np.concatenate([np.asarray(params["zm_b"], f32), np.asarray(params["zv_b"], f32)])

  # latent: concat(linear1, linear2) as block-column weights + fused bias.
  wl1 = np.asarray(params["lin1_w"], f32)    # (n1, L)
  wl2 = np.asarray(params["lin2_w"], f32)    # (n2, L)
  n1 = wl1.shape[0]
  Wl1 = np.zeros((L, L), f32); Wl1[:, :n1] = wl1.T
  Wl2 = np.zeros((L, L), f32); Wl2[:, n1:] = wl2.T
  bcat = np.concatenate([np.asarray(params["lin1_b"], f32), np.asarray(params["lin2_b"], f32)])

  # decode_linear with the view(B, C2, H/4, W/4) order folded into the columns.
  H4 = W4 = input_size // 4
  assert H4 == H2 and W4 == W2 and e2 == C2 * H4 * W4
  wdl = np.asarray(params["dec_lin_w"], f32)  # (C2*H4*W4, L)
  bdl = np.asarray(params["dec_lin_b"], f32)
  Wdec = np.zeros((L, e2), f32)
  bdec = np.zeros((e2,), f32)
  for h in range(H4):
    for w in range(W4):
      for c in range(C2):
        lane = (h * W4 + w) * C2 + c
        tidx = c * H4 * W4 + h * W4 + w
        Wdec[:, lane] = wdl[tidx, :]
        bdec[lane] = bdl[tidx]

  # Transposed convolutions as exact dense linear maps.
  Wd2, bd2row, H5, W5 = _dense_deconv(np.asarray(params["deconv2_w"], f32),
                                      np.asarray(params["deconv2_b"], f32), H4, W4, 2, 1)
  w_d1 = np.asarray(params["deconv1_w"], f32)
  Cout = w_d1.shape[1]
  Wd1, bd1row, H6, W6 = _dense_deconv(w_d1, np.asarray(params["deconv1_b"], f32),
                                      H5, W5, 2, 1)
  e5 = H5 * W5 * C1
  e6 = H6 * W6 * Cout
  assert H6 == H0 and W6 == W0

  # ---- pack ALL matmul weights into one bf16 slab (static row-offset carve-up) ----
  weight_mats = [("c1", Wc1), ("c2", Wc2), ("zmv", Wzmv), ("l1", Wl1), ("l2", Wl2),
                 ("dec", Wdec), ("d2", Wd2), ("d1", Wd1)]
  slab_w = _align(max(m.shape[1] for _, m in weight_mats), 128)
  offs = {}
  row = 0
  for name, m in weight_mats:
    offs[name] = row
    row += _align(m.shape[0], 16)          # bf16 sublane-tile aligned segments
  total_rows = _align(row, 16)
  wslab = np.zeros((total_rows, slab_w), f32)
  for name, m in weight_mats:
    r = offs[name]
    wslab[r:r + m.shape[0], :m.shape[1]] = m

  # ---- pack bias / affine rows into one f32 slab (row order fixed by the kernel) ----
  bias_rows = [b1row, b2row, gamma_row, beta_row, bzmv, bcat, bdec, bd2row, bd1row]
  bslab = np.zeros((_align(len(bias_rows), 8), slab_w), f32)
  for i, v in enumerate(bias_rows):
    bslab[i, :v.shape[0]] = v

  arrays = dict(
      emb=jnp.asarray(np.asarray(params["emb"], f32)),
      wslab=jnp.asarray(wslab, dtype=jnp.bfloat16),
      bslab=jnp.asarray(bslab),
      ppt=jnp.asarray(ppt),
  )
  spec = dict(e0=e0, e1=e1, e2=e2, e5=e5, e6=e6, L=L,
              H0=H0, W0=W0, c_out=Cout, hw2=H2 * W2, offs=offs)
  return arrays, spec


# ----------------------------------------------------------------------------------
# Forward pass (one pallas_call, 4 inputs, 2 outputs, minimal boundary glue)
# ----------------------------------------------------------------------------------
def make_cvae2_forward(spec):
  e0, e1, e2, e5, e6, L = (spec[k] for k in ("e0", "e1", "e2", "e5", "e6", "L"))
  H0, W0, c_out, hw2, offs = spec["H0"], spec["W0"], spec["c_out"], spec["hw2"], spec["offs"]
  vmem = pl.BlockSpec(memory_space=pltpu.MemorySpace.VMEM)

  def forward(arrays, x, y, eps):
    B = x.shape[0]
    # TODO(synk): nn.Embedding gather has no small-scale Pallas equivalent; kept as
    # jnp.take at the kernel boundary.
    y_emb = jnp.take(arrays["emb"], y, axis=0)                             # (B, L)
    x_flat = jnp.transpose(x, (0, 2, 3, 1)).reshape(B, e0).astype(jnp.float32)
    data = jnp.concatenate([x_flat, eps.astype(jnp.float32), y_emb], axis=1)

    kernel = functools.partial(_cvae2_kernel, e0=e0, e1=e1, e2=e2, e5=e5, e6=e6,
                               L=L, inv_n=1.0 / float(B * hw2), offs=offs)
    zout, rec = pl.pallas_call(
        kernel,
        out_shape=(jax.ShapeDtypeStruct((B, 2 * L), jnp.float32),
                   jax.ShapeDtypeStruct((B, e6), jnp.float32)),
        in_specs=[vmem, vmem, vmem, vmem],
        out_specs=(vmem, vmem),
    )(data, arrays["wslab"], arrays["bslab"], arrays["ppt"])

    z_mean = zout[:, :L]
    z_log_var = zout[:, L:]
    recon = rec.reshape(B, H0, W0, c_out).transpose(0, 3, 1, 2)            # back to NCHW
    return z_mean, z_log_var, recon

  return jax.jit(forward)


# ----------------------------------------------------------------------------------
# Deterministic parameters in PyTorch layouts
# ----------------------------------------------------------------------------------
def init_params(key, num_labels, n_channels, convDim1, convDim2, latent_dim,
                input_size, k, alpha):
  n1 = latent_dim - latent_dim // alpha
  n2 = latent_dim // alpha
  h1 = (input_size + 2 - k) // 2 + 1
  h2 = (h1 + 2 - k) // 2 + 1
  enc_out = convDim2 * h2 * h2

  keys = jax.random.split(key, 20)

  def nrm(kk, shape, scale=0.05):
    return scale * jax.random.normal(kk, shape, jnp.float32)

  p = {}
  p["emb"] = nrm(keys[0], (num_labels, latent_dim), 1.0)
  p["conv1_w"] = nrm(keys[1], (convDim1, n_channels, k, k))          # Conv2d (O,C,k,k)
  p["conv1_b"] = nrm(keys[2], (convDim1,))
  p["conv2_w"] = nrm(keys[3], (convDim2, convDim1, k, k))
  p["conv2_b"] = nrm(keys[4], (convDim2,))
  p["bn_g"] = jnp.ones((convDim2,), jnp.float32)
  p["bn_b"] = jnp.zeros((convDim2,), jnp.float32)
  p["zm_w"] = nrm(keys[5], (latent_dim, enc_out))                    # Linear (out,in)
  p["zm_b"] = nrm(keys[6], (latent_dim,))
  p["zv_w"] = nrm(keys[7], (latent_dim, enc_out))
  p["zv_b"] = nrm(keys[8], (latent_dim,))
  p["lin1_w"] = nrm(keys[9], (n1, latent_dim))
  p["lin1_b"] = nrm(keys[10], (n1,))
  p["lin2_w"] = nrm(keys[11], (n2, latent_dim))
  p["lin2_b"] = nrm(keys[12], (n2,))
  p["dec_lin_w"] = nrm(keys[13], (enc_out, latent_dim))
  p["dec_lin_b"] = nrm(keys[14], (enc_out,))
  p["deconv2_w"] = nrm(keys[15], (convDim2, convDim1, k, k))         # ConvT (Cin,Cout,k,k)
  p["deconv2_b"] = nrm(keys[16], (convDim1,))
  p["deconv1_w"] = nrm(keys[17], (convDim1, n_channels, k, k))
  p["deconv1_b"] = nrm(keys[18], (n_channels,))
  return p


# ----------------------------------------------------------------------------------
# main
# ----------------------------------------------------------------------------------
if __name__ == "__main__":
  # Small shapes consistent with the module (input_size divisible by 4, latent_dim=16).
  B, n_channels, input_size = 2, 1, 16
  convDim1, convDim2, latent_dim = 8, 16, 16
  num_labels, kernel_size, alpha = 10, 4, 8

  key = jax.random.PRNGKey(0)
  kp, kx, ky, keps = jax.random.split(key, 4)

  params = init_params(kp, num_labels, n_channels, convDim1, convDim2,
                       latent_dim, input_size, kernel_size, alpha)
  arrays, spec = prepare_params(params, batch=B, input_size=input_size)

  x = jax.random.normal(kx, (B, n_channels, input_size, input_size), jnp.float32)
  y = jax.random.randint(ky, (B,), 0, num_labels)
  # torch.randn epsilon from sampling() is supplied as an explicit deterministic input.
  eps = jax.random.normal(keps, (B, latent_dim), jnp.float32)

  fwd = make_cvae2_forward(spec)
  z_mean, z_log_var, recon = fwd(arrays, x, y, eps)
  jax.block_until_ready((z_mean, z_log_var, recon))

  assert z_mean.shape == (B, latent_dim)
  assert z_log_var.shape == (B, latent_dim)
  assert recon.shape == (B, n_channels, input_size, input_size)
  assert bool(jnp.all(jnp.isfinite(recon)))
  assert bool(jnp.all((recon >= 0.0) & (recon <= 1.0)))      # sigmoid output
  assert bool(jnp.all(z_log_var >= 0.0))                     # softplus output
  print("KERNEL_OK")
</pallas_src>

<mosaic_0001>
module attributes {stable_mosaic.version = 11 : i64} {
  func.func @_cvae2_kernel(%arg0: memref<2x288xf32, #tpu.memory_space<vmem>>, %arg1: memref<1840x512xbf16, #tpu.memory_space<vmem>>, %arg2: memref<16x512xf32, #tpu.memory_space<vmem>>, %arg3: memref<256x256xf32, #tpu.memory_space<vmem>>, %arg4: memref<2x32xf32, #tpu.memory_space<vmem>>, %arg5: memref<2x256xf32, #tpu.memory_space<vmem>>) attributes {dimension_semantics = [], scalar_prefetch = 0 : i64, scratch_operands = 0 : i64, tpu.core_type = #tpu.core_type<tc>} {
    %c0 = arith.constant 0 : index
    %c0_0 = arith.constant 0 : index
    %0 = vector.load %arg1[%c0, %c0_0] : memref<1840x512xbf16, #tpu.memory_space<vmem>>, vector<256x512xbf16>
    %c256 = arith.constant 256 : index
    %c0_1 = arith.constant 0 : index
    %1 = vector.load %arg1[%c256, %c0_1] : memref<1840x512xbf16, #tpu.memory_space<vmem>>, vector<512x256xbf16>
    %c768 = arith.constant 768 : index
    %c0_2 = arith.constant 0 : index
    %2 = vector.load %arg1[%c768, %c0_2] : memref<1840x512xbf16, #tpu.memory_space<vmem>>, vector<256x32xbf16>
    %c1024 = arith.constant 1024 : index
    %c0_3 = arith.constant 0 : index
    %3 = vector.load %arg1[%c1024, %c0_3] : memref<1840x512xbf16, #tpu.memory_space<vmem>>, vector<16x16xbf16>
    %c1040 = arith.constant 1040 : index
    %c0_4 = arith.constant 0 : index
    %4 = vector.load %arg1[%c1040, %c0_4] : memref<1840x512xbf16, #tpu.memory_space<vmem>>, vector<16x16xbf16>
    %c1056 = arith.constant 1056 : index
    %c0_5 = arith.constant 0 : index
    %5 = vector.load %arg1[%c1056, %c0_5] : memref<1840x512xbf16, #tpu.memory_space<vmem>>, vector<16x256xbf16>
    %c1072 = arith.constant 1072 : index
    %c0_6 = arith.constant 0 : index
    %6 = vector.load %arg1[%c1072, %c0_6] : memref<1840x512xbf16, #tpu.memory_space<vmem>>, vector<256x512xbf16>
    %c1328 = arith.constant 1328 : index
    %c0_7 = arith.constant 0 : index
    %7 = vector.load %arg1[%c1328, %c0_7] : memref<1840x512xbf16, #tpu.memory_space<vmem>>, vector<512x256xbf16>
    %c0_8 = arith.constant 0 : index
    %c0_9 = arith.constant 0 : index
    %8 = vector.load %arg0[%c0_8, %c0_9] : memref<2x288xf32, #tpu.memory_space<vmem>>, vector<2x256xf32>
    %c0_10 = arith.constant 0 : index
    %c256_11 = arith.constant 256 : index
    %9 = vector.load %arg0[%c0_10, %c256_11] : memref<2x288xf32, #tpu.memory_space<vmem>>, vector<2x16xf32>
    %c0_12 = arith.constant 0 : index
    %c272 = arith.constant 272 : index
    %10 = vector.load %arg0[%c0_12, %c272] : memref<2x288xf32, #tpu.memory_space<vmem>>, vector<2x16xf32>
    %11 = arith.truncf %8 : vector<2x256xf32> to vector<2x256xbf16>
    %cst = arith.constant dense<0.000000e+00> : vector<2x512xf32>
    %12 = tpu.matmul %11, %0, %cst {dimension_numbers = #tpu.dot_dimension_numbers<[1], [0], [0], [1], [0, 0, 1, 1], [], []>} : vector<2x256xbf16>, vector<256x512xbf16>, vector<2x512xf32> -> vector<2x512xf32>
    %c0_13 = arith.constant 0 : index
    %c0_14 = arith.constant 0 : index
    %13 = vector.load %arg2[%c0_13, %c0_14] : memref<16x512xf32, #tpu.memory_space<vmem>>, vector<1x512xf32>
    %14 = vector.broadcast %13 : vector<1x512xf32> to vector<2x512xf32>
    %15 = arith.addf %12, %14 : vector<2x512xf32>
    %cst_15 = arith.constant 0.000000e+00 : f32
    %16 = vector.broadcast %cst_15 : f32 to vector<2x512xf32>
    %17 = arith.maximumf %15, %16 : vector<2x512xf32>
    %18 = arith.truncf %17 : vector<2x512xf32> to vector<2x512xbf16>
    %cst_16 = arith.constant dense<0.000000e+00> : vector<2x256xf32>
    %19 = tpu.matmul %18, %1, %cst_16 {dimension_numbers = #tpu.dot_dimension_numbers<[1], [0], [0], [1], [0, 0, 1, 1], [], []>} : vector<2x512xbf16>, vector<512x256xbf16>, vector<2x256xf32> -> vector<2x256xf32>
    %c1 = arith.constant 1 : index
    %c0_17 = arith.constant 0 : index
    %20 = vector.load %arg2[%c1, %c0_17] : memref<16x512xf32, #tpu.memory_space<vmem>>, vector<1x256xf32>
    %21 = vector.broadcast %20 : vector<1x256xf32> to vector<2x256xf32>
    %22 = arith.addf %19, %21 : vector<2x256xf32>
    %cst_18 = arith.constant dense<0.000000e+00> : vector<256xf32>
    %23 = vector.multi_reduction <add>, %22, %cst_18 [0] : vector<2x256xf32> to vector<256xf32>
    %24 = vector.shape_cast %23 : vector<256xf32> to vector<1x256xf32>
    %c0_19 = arith.constant 0 : index
    %c0_20 = arith.constant 0 : index
    %25 = vector.load %arg3[%c0_19, %c0_20] : memref<256x256xf32, #tpu.memory_space<vmem>>, vector<256x256xf32>
    %cst_21 = arith.constant dense<0.000000e+00> : vector<1x256xf32>
    %26 = tpu.matmul %24, %25, %cst_21 {dimension_numbers = #tpu.dot_dimension_numbers<[1], [0], [0], [1], [0, 0, 1, 1], [], []>} : vector<1x256xf32>, vector<256x256xf32>, vector<1x256xf32> -> vector<1x256xf32>
    %cst_22 = arith.constant 3.125000e-02 : f32
    %27 = vector.broadcast %cst_22 : f32 to vector<1x256xf32>
    %28 = arith.mulf %26, %27 : vector<1x256xf32>
    %29 = vector.broadcast %28 : vector<1x256xf32> to vector<2x256xf32>
    %30 = arith.subf %22, %29 : vector<2x256xf32>
    %31 = arith.mulf %30, %30 : vector<2x256xf32>
    %cst_23 = arith.constant dense<0.000000e+00> : vector<256xf32>
    %32 = vector.multi_reduction <add>, %31, %cst_23 [0] : vector<2x256xf32> to vector<256xf32>
    %33 = vector.shape_cast %32 : vector<256xf32> to vector<1x256xf32>
    %c0_24 = arith.constant 0 : index
    %c0_25 = arith.constant 0 : index
    %34 = vector.load %arg3[%c0_24, %c0_25] : memref<256x256xf32, #tpu.memory_space<vmem>>, vector<256x256xf32>
    %cst_26 = arith.constant dense<0.000000e+00> : vector<1x256xf32>
    %35 = tpu.matmul %33, %34, %cst_26 {dimension_numbers = #tpu.dot_dimension_numbers<[1], [0], [0], [1], [0, 0, 1, 1], [], []>} : vector<1x256xf32>, vector<256x256xf32>, vector<1x256xf32> -> vector<1x256xf32>
    %cst_27 = arith.constant 3.125000e-02 : f32
    %36 = vector.broadcast %cst_27 : f32 to vector<1x256xf32>
    %37 = arith.mulf %35, %36 : vector<1x256xf32>
    %cst_28 = arith.constant 9.99999974E-6 : f32
    %38 = vector.broadcast %cst_28 : f32 to vector<1x256xf32>
    %39 = arith.addf %37, %38 : vector<1x256xf32>
    %40 = math.rsqrt %39 : vector<1x256xf32>
    %41 = vector.broadcast %40 : vector<1x256xf32> to vector<2x256xf32>
    %42 = arith.mulf %30, %41 : vector<2x256xf32>
    %c2 = arith.constant 2 : index
    %c0_29 = arith.constant 0 : index
    %43 = vector.load %arg2[%c2, %c0_29] : memref<16x512xf32, #tpu.memory_space<vmem>>, vector<1x256xf32>
    %44 = vector.broadcast %43 : vector<1x256xf32> to vector<2x256xf32>
    %45 = arith.mulf %42, %44 : vector<2x256xf32>
    %c3 = arith.constant 3 : index
    %c0_30 = arith.constant 0 : index
    %46 = vector.load %arg2[%c3, %c0_30] : memref<16x512xf32, #tpu.memory_space<vmem>>, vector<1x256xf32>
    %47 = vector.broadcast %46 : vector<1x256xf32> to vector<2x256xf32>
    %48 = arith.addf %45, %47 : vector<2x256xf32>
    %cst_31 = arith.constant 0.000000e+00 : f32
    %49 = vector.broadcast %cst_31 : f32 to vector<2x256xf32>
    %50 = arith.maximumf %48, %49 : vector<2x256xf32>
    %51 = arith.truncf %50 : vector<2x256xf32> to vector<2x256xbf16>
    %cst_32 = arith.constant dense<0.000000e+00> : vector<2x32xf32>
    %52 = tpu.matmul %51, %2, %cst_32 {dimension_numbers = #tpu.dot_dimension_numbers<[1], [0], [0], [1], [0, 0, 1, 1], [], []>} : vector<2x256xbf16>, vector<256x32xbf16>, vector<2x32xf32> -> vector<2x32xf32>
    %c4 = arith.constant 4 : index
    %c0_33 = arith.constant 0 : index
    %53 = vector.load %arg2[%c4, %c0_33] : memref<16x512xf32, #tpu.memory_space<vmem>>, vector<1x32xf32>
    %54 = vector.broadcast %53 : vector<1x32xf32> to vector<2x32xf32>
    %55 = arith.addf %52, %54 : vector<2x32xf32>
    %56 = tpu.iota {dimensions = array<i32: 1>} : vector<2x32xi32>
    %c16_i32 = arith.constant 16 : i32
    %57 = vector.broadcast %c16_i32 : i32 to vector<2x32xi32>
    %58 = arith.cmpi slt, %56, %57 : vector<2x32xi32>
    %cst_34 = arith.constant 0.000000e+00 : f32
    %59 = vector.broadcast %cst_34 : f32 to vector<2x32xf32>
    %60 = arith.maximumf %55, %59 : vector<2x32xf32>
    %61 = vector.broadcast %cst_34 : f32 to vector<2x32xf32>
    %62 = arith.subf %55, %61 : vector<2x32xf32>
    %63 = arith.cmpf one, %62, %62 : vector<2x32xf32>
    %64 = vector.broadcast %cst_34 : f32 to vector<2x32xf32>
    %65 = arith.addf %55, %64 : vector<2x32xf32>
    %66 = math.absf %62 : vector<2x32xf32>
    %cst_35 = arith.constant 0.000000e+00 : f32
    %67 = vector.broadcast %cst_35 : f32 to vector<2x32xf32>
    %68 = arith.subf %67, %66 : vector<2x32xf32>
    %69 = math.exp %68 : vector<2x32xf32>
    %70 = math.log1p %69 : vector<2x32xf32>
    %71 = arith.addf %60, %70 : vector<2x32xf32>
    %72 = arith.select %63, %65, %71 : vector<2x32xi1>, vector<2x32xf32>
    %73 = arith.select %58, %55, %72 : vector<2x32xi1>, vector<2x32xf32>
    %c0_36 = arith.constant 0 : index
    %c0_37 = arith.constant 0 : index
    %74 = vector.load %arg4[%c0_36, %c0_37] : memref<2x32xf32, #tpu.memory_space<vmem>>, vector<2x32xf32>
    tpu.vector_store %arg4[%c0_36, %c0_37], %73 {strides = array<i32>} : memref<2x32xf32, #tpu.memory_space<vmem>>, vector<2x32xf32>,
    %75 = vector.extract_strided_slice %55 {offsets = [0, 0], sizes = [2, 16], strides = [1, 1]} : vector<2x32xf32> to vector<2x16xf32>
    %76 = vector.extract_strided_slice %73 {offsets = [0, 16], sizes = [2, 16], strides = [1, 1]} : vector<2x32xf32> to vector<2x16xf32>
    %cst_38 = arith.constant 5.000000e-01 : f32
    %77 = vector.broadcast %cst_38 : f32 to vector<2x16xf32>
    %78 = arith.mulf %77, %76 : vector<2x16xf32>
    %79 = math.exp %78 : vector<2x16xf32>
    %80 = arith.mulf %79, %9 : vector<2x16xf32>
    %81 = arith.addf %75, %80 : vector<2x16xf32>
    %82 = arith.truncf %81 : vector<2x16xf32> to vector<2x16xbf16>
    %cst_39 = arith.constant dense<0.000000e+00> : vector<2x16xf32>
    %83 = tpu.matmul %82, %3, %cst_39 {dimension_numbers = #tpu.dot_dimension_numbers<[1], [0], [0], [1], [0, 0, 1, 1], [], []>} : vector<2x16xbf16>, vector<16x16xbf16>, vector<2x16xf32> -> vector<2x16xf32>
    %84 = arith.truncf %10 : vector<2x16xf32> to vector<2x16xbf16>
    %cst_40 = arith.constant dense<0.000000e+00> : vector<2x16xf32>
    %85 = tpu.matmul %84, %4, %cst_40 {dimension_numbers = #tpu.dot_dimension_numbers<[1], [0], [0], [1], [0, 0, 1, 1], [], []>} : vector<2x16xbf16>, vector<16x16xbf16>, vector<2x16xf32> -> vector<2x16xf32>
    %86 = arith.addf %83, %85 : vector<2x16xf32>
    %c5 = arith.constant 5 : index
    %c0_41 = arith.constant 0 : index
    %87 = vector.load %arg2[%c5, %c0_41] : memref<16x512xf32, #tpu.memory_space<vmem>>, vector<1x16xf32>
    %88 = vector.broadcast %87 : vector<1x16xf32> to vector<2x16xf32>
    %89 = arith.addf %86, %88 : vector<2x16xf32>
    %90 = arith.negf %89 : vector<2x16xf32>
    %91 = math.exp %90 : vector<2x16xf32>
    %cst_42 = arith.constant 1.000000e+00 : f32
    %92 = vector.broadcast %cst_42 : f32 to vector<2x16xf32>
    %93 = arith.addf %92, %91 : vector<2x16xf32>
    %94 = arith.divf %92, %93 : vector<2x16xf32>
    %95 = arith.truncf %94 : vector<2x16xf32> to vector<2x16xbf16>
    %cst_43 = arith.constant dense<0.000000e+00> : vector<2x256xf32>
    %96 = tpu.matmul %95, %5, %cst_43 {dimension_numbers = #tpu.dot_dimension_numbers<[1], [0], [0], [1], [0, 0, 1, 1], [], []>} : vector<2x16xbf16>, vector<16x256xbf16>, vector<2x256xf32> -> vector<2x256xf32>
    %c6 = arith.constant 6 : index
    %c0_44 = arith.constant 0 : index
    %97 = vector.load %arg2[%c6, %c0_44] : memref<16x512xf32, #tpu.memory_space<vmem>>, vector<1x256xf32>
    %98 = vector.broadcast %97 : vector<1x256xf32> to vector<2x256xf32>
    %99 = arith.addf %96, %98 : vector<2x256xf32>
    %100 = arith.truncf %99 : vector<2x256xf32> to vector<2x256xbf16>
    %cst_45 = arith.constant dense<0.000000e+00> : vector<2x512xf32>
    %101 = tpu.matmul %100, %6, %cst_45 {dimension_numbers = #tpu.dot_dimension_numbers<[1], [0], [0], [1], [0, 0, 1, 1], [], []>} : vector<2x256xbf16>, vector<256x512xbf16>, vector<2x512xf32> -> vector<2x512xf32>
    %c7 = arith.constant 7 : index
    %c0_46 = arith.constant 0 : index
    %102 = vector.load %arg2[%c7, %c0_46] : memref<16x512xf32, #tpu.memory_space<vmem>>, vector<1x512xf32>
    %103 = vector.broadcast %102 : vector<1x512xf32> to vector<2x512xf32>
    %104 = arith.addf %101, %103 : vector<2x512xf32>
    %cst_47 = arith.constant 0.000000e+00 : f32
    %105 = vector.broadcast %cst_47 : f32 to vector<2x512xf32>
    %106 = arith.maximumf %104, %105 : vector<2x512xf32>
    %107 = arith.truncf %106 : vector<2x512xf32> to vector<2x512xbf16>
    %cst_48 = arith.constant dense<0.000000e+00> : vector<2x256xf32>
    %108 = tpu.matmul %107, %7, %cst_48 {dimension_numbers = #tpu.dot_dimension_numbers<[1], [0], [0], [1], [0, 0, 1, 1], [], []>} : vector<2x512xbf16>, vector<512x256xbf16>, vector<2x256xf32> -> vector<2x256xf32>
    %c8 = arith.constant 8 : index
    %c0_49 = arith.constant 0 : index
    %109 = vector.load %arg2[%c8, %c0_49] : memref<16x512xf32, #tpu.memory_space<vmem>>, vector<1x256xf32>
    %110 = vector.broadcast %109 : vector<1x256xf32> to vector<2x256xf32>
    %111 = arith.addf %108, %110 : vector<2x256xf32>
    %112 = arith.negf %111 : vector<2x256xf32>
    %113 = math.exp %112 : vector<2x256xf32>
    %cst_50 = arith.constant 1.000000e+00 : f32
    %114 = vector.broadcast %cst_50 : f32 to vector<2x256xf32>
    %115 = arith.addf %114, %113 : vector<2x256xf32>
    %116 = arith.divf %114, %115 : vector<2x256xf32>
    %c0_51 = arith.constant 0 : index
    %c0_52 = arith.constant 0 : index
    %117 = vector.load %arg5[%c0_51, %c0_52] : memref<2x256xf32, #tpu.memory_space<vmem>>, vector<2x256xf32>
    tpu.vector_store %arg5[%c0_51, %c0_52], %116 {strides = array<i32>} : memref<2x256xf32, #tpu.memory_space<vmem>>, vector<2x256xf32>,
    return
  }
}

</mosaic_0001>

<bundles_post_ra>
// kernel: forward.1
= control target key start
LH: loop header
LB: loop body
LE: loop exit
PB: predicated region body
PF: predicated region fallthrough
CT: control target
= control target key end

     0   :  { %11 = vsyncpa [#allocation3], 0  ;;  %s3715_s0 = inlined_call_operand.vmem [shape: f32[2,288], index: 0, kind: input, shape index: {}]   ;;  %s3716_s1 = inlined_call_operand.hbm [shape: bf16[1840,512], index: 1, kind: input, shape index: {}]   ;;  %s3717_s2 = inlined_call_operand.hbm [shape: f32[16,512], index: 2, kind: input, shape index: {}]   ;;  %s3718_s3 = inlined_call_operand.hbm [shape: f32[256,256], index: 3, kind: input, shape index: {}]   ;;  %s3719_s4 = inlined_call_operand.vmem [shape: f32[2,32], index: 4, kind: output, shape index: {0}]   ;;  %s3720_s5 = inlined_call_operand.vmem [shape: f32[2,256], index: 5, kind: output, shape index: {1}]  }
   0x1   :  { %12 = vsyncpa [#allocation5], 0  ;;  %s3586_s18 = smov [#allocation4]  }
   0x2   :  { %s32_s19 = sshll.u32 %s3586_s18, 4  ;;  %s33_s19 = int_to_ptr.vmem [resolvable:$true] %s32_s19 }
   0x3   :  { %s3530_s20 = scalar_lea.vmem %s33_s19, 1024  ;;  %p3535_p1 = scmp.lt.s32.totalorder %s33_s19, %s33_s19 }
   0x4   :  { %p3531_p0 = scmp.ne.s32.totalorder %s33_s19, %s3530_s20  ;;  %p3536_p2 = scmp.lt.s32.totalorder %s3530_s20, %s3530_s20 }
   0x6   :  { %p3537_p3 = por %p3536_p2, %p3535_p1 }
   0x8   :  { %p3538_p4 = pnand %p3537_p3, %p3531_p0 }
   0xa   :  { %3541 = shalt.err (!%p3538_p4)
}
   0xb   :  { %s3587_s21 = smov 512   ;;  %s3588_s22 = smov 32  }
   0xc   :  { %38 = dma.hbm_to_vmem [thread:$0]  %s3717_s2, 1024, %s33_s19, [#allocation5], %s3587_s21, %s3587_s21, %s3588_s22  }
   0xd   :  { %s3589_s25 = smov [#allocation2]  }
   0xe   :  { %s20_s26 = sshll.u32 %s3589_s25, 4  ;;  %s21_s26 = int_to_ptr.vmem [resolvable:$true] %s20_s26 }
   0xf   :  { %s3550_s27 = scalar_lea.vmem %s21_s26, 58880  ;;  %p3555_p6 = scmp.lt.s32.totalorder %s21_s26, %s21_s26 }
  0x10   :  { %p3551_p5 = scmp.ne.s32.totalorder %s21_s26, %s3550_s27  ;;  %p3556_p7 = scmp.lt.s32.totalorder %s3550_s27, %s3550_s27 }
  0x12   :  { %p3557_p8 = por %p3556_p7, %p3555_p6 }
  0x14   :  { %p3558_p9 = pnand %p3557_p8, %p3551_p5 }
  0x16   :  { %3561 = shalt.err (!%p3558_p9)
}
  0x17   :  { %s3590_s28 = smov 256   ;;  %s3591_s29 = smov 16  }
  0x18   :  { %26 = dma.hbm_to_vmem [thread:$0]  %s3716_s1, 58880, %s21_s26, [#allocation3], %s3590_s28, %s3590_s28, %s3591_s29  }
  0x19   :  { %s3592_s7 = smov [#allocation6]  }
  0x1a   :  { %s44_s8 = sshll.u32 %s3592_s7, 4  ;;  %s45_s8 = int_to_ptr.vmem [resolvable:$true] %s44_s8 }
  0x1b   :  { %s3570_s2 = scalar_lea.vmem %s45_s8, 8192  ;;  %p3575_p11 = scmp.lt.s32.totalorder %s45_s8, %s45_s8 }
  0x1c   :  { %p3571_p10 = scmp.ne.s32.totalorder %s45_s8, %s3570_s2  ;;  %p3576_p12 = scmp.lt.s32.totalorder %s3570_s2, %s3570_s2 }
  0x1e   :  { %p3577_p13 = por %p3576_p12, %p3575_p11 }
  0x20   :  { %p3578_p0 = pnand %p3577_p13, %p3571_p10 }
  0x22   :  { %3581 = shalt.err (!%p3578_p0)
}
  0x23   :  { %50 = dma.hbm_to_vmem [thread:$0]  %s3718_s3, 8192, %s45_s8, [#allocation5], %s3590_s28, %s3590_s28, %s3591_s29  }
  0x24   :  { %3582 = dma.done.wait [#allocation3], 58880  }
  0x25   :  { %3583 = vsyncadd [#allocation3], 4294908416 }
  0x26   :  { %3584 = dma.done.wait [#allocation5], 9216  }
  0x27   :  { %3585 = vsyncadd [#allocation5], 4294958080  ;;  %v3095_v0 = vld [vmem:[#allocation2 + $0xe4] ss:$16 sps:$4 sm:$0xff]   ;;  %v3097_v1 = vld [vmem:[#allocation2 + $0xec] ss:$16 sps:$4 sm:$0xff]  }
  0x28   :  { %712 = vmatprep.subr.bf16.mxu0 %v3095_v0  ;;  %v3099_v2 = vld [vmem:[#allocation2 + $0xe0] ss:$16 sps:$4 sm:$0xff]   ;;  %v3100_v3 = vld [vmem:[#allocation2 + $0xe8] ss:$16 sps:$4 sm:$0xff]   ;;  %753 = vmatprep.subr.bf16.mxu1 %v3097_v1  ;;  %v3101_v4 = vld [vmem:[#allocation2 + $0xc4] ss:$16 sps:$4 sm:$0xff]  }
  0x29   :  { %713 = vmatpush1.bf16.msra.mxu0 %v3099_v2  ;;  %754 = vmatpush1.bf16.msra.mxu1 %v3100_v3  ;;  %v3103_v5 = vld [vmem:[#allocation2 + $0xcc] ss:$16 sps:$4 sm:$0xff]   ;;  %v3105_v6 = vld [vmem:[#allocation2 + $0xc0] ss:$16 sps:$4 sm:$0xff]   ;;  %v3106_v7 = vld [vmem:[#allocation2 + $0xc8] ss:$16 sps:$4 sm:$0xff]  }
  0x2a   :  { %714 = vmatprep.subr.bf16.mxu0 %v3101_v4  ;;  %755 = vmatprep.subr.bf16.mxu1 %v3103_v5  ;;  %v3107_v8 = vld [vmem:[#allocation2 + $0xa4] ss:$16 sps:$4 sm:$0xff]   ;;  %v3109_v9 = vld [vmem:[#allocation2 + $0xac] ss:$16 sps:$4 sm:$0xff]   ;;  %v3111_v10 = vld [vmem:[#allocation2 + $0xa0] ss:$16 sps:$4 sm:$0xff]  }
  0x2b   :  { %v3112_v11 = vld [vmem:[#allocation2 + $0xa8] ss:$16 sps:$4 sm:$0xff]   ;;  %v3113_v12 = vld [vmem:[#allocation2 + $0x84] ss:$16 sps:$4 sm:$0xff]   ;;  %v3115_v13 = vld [vmem:[#allocation2 + $0x8c] ss:$16 sps:$4 sm:$0xff]  }
  0x2c   :  { %v3117_v14 = vld [vmem:[#allocation2 + $0x80] ss:$16 sps:$4 sm:$0xff]   ;;  %v3118_v15 = vld [vmem:[#allocation2 + $0x88] ss:$16 sps:$4 sm:$0xff]   ;;  %v3119_v16 = vld [vmem:[#allocation2 + $0x64] ss:$16 sps:$4 sm:$0xff]  }
  0x2d   :  { %715 = vmatpush1.bf16.msra.mxu0 %v3105_v6  ;;  %756 = vmatpush1.bf16.msra.mxu1 %v3106_v7  ;;  %v3121_v17 = vld [vmem:[#allocation2 + $0x6c] ss:$16 sps:$4 sm:$0xff]   ;;  %v3123_v18 = vld [vmem:[#allocation2 + $0x60] ss:$16 sps:$4 sm:$0xff]   ;;  %v3124_v19 = vld [vmem:[#allocation2 + $0x68] ss:$16 sps:$4 sm:$0xff]  }
  0x2e   :  { %716 = vmatprep.subr.bf16.mxu0 %v3107_v8  ;;  %757 = vmatprep.subr.bf16.mxu1 %v3109_v9  ;;  %v3125_v20 = vld [vmem:[#allocation2 + $0x44] ss:$16 sps:$4 sm:$0xff]   ;;  %v3127_v21 = vld [vmem:[#allocation2 + $0x4c] ss:$16 sps:$4 sm:$0xff]   ;;  %v3129_v22 = vld [vmem:[#allocation2 + $0x40] ss:$16 sps:$4 sm:$0xff]  }
  0x2f   :  { %v3130_v23 = vld [vmem:[#allocation2 + $0x48] ss:$16 sps:$4 sm:$0xff]   ;;  %v3131_v24 = vld [vmem:[#allocation2 + $0x24] ss:$16 sps:$4 sm:$0xff]   ;;  %v3133_v25 = vld [vmem:[#allocation2 + $0x2c] ss:$16 sps:$4 sm:$0xff]  }
  0x30   :  { %v3135_v26 = vld [vmem:[#allocation2 + $0x20] ss:$16 sps:$4 sm:$0xff]   ;;  %v3136_v27 = vld [vmem:[#allocation2 + $0x28] ss:$16 sps:$4 sm:$0xff]   ;;  %v3137_v28 = vld [vmem:[#allocation2 + $0x4] ss:$16 sps:$4 sm:$0xff]  }
  0x31   :  { %717 = vmatpush1.bf16.msra.mxu0 %v3111_v10  ;;  %758 = vmatpush1.bf16.msra.mxu1 %v3112_v11  ;;  %v3139_v29 = vld [vmem:[#allocation2 + $0xc] ss:$16 sps:$4 sm:$0xff]   ;;  %v3141_v30 = vld [vmem:[#allocation2] ss:$16 sps:$4 sm:$0xff]   ;;  %v3142_v31 = vld [vmem:[#allocation2 + $0x8] ss:$16 sps:$4 sm:$0xff]  }
  0x32   :  { %718 = vmatprep.subr.bf16.mxu0 %v3113_v12  ;;  %759 = vmatprep.subr.bf16.mxu1 %v3115_v13  ;;  %v3143_v32 = vld [vmem:[#allocation2 + $0x1e4] ss:$16 sps:$4 sm:$0xff]   ;;  %v3145_v33 = vld [vmem:[#allocation2 + $0x1ec] ss:$16 sps:$4 sm:$0xff]   ;;  %v3147_v34 = vld [vmem:[#allocation2 + $0x1e0] ss:$16 sps:$4 sm:$0xff]  }
  0x33   :  { %v3148_v35 = vld [vmem:[#allocation2 + $0x1e8] ss:$16 sps:$4 sm:$0xff]   ;;  %v3149_v36 = vld [vmem:[#allocation2 + $0x1c4] ss:$16 sps:$4 sm:$0xff]   ;;  %v3151_v37 = vld [vmem:[#allocation2 + $0x1cc] ss:$16 sps:$4 sm:$0xff]  }
  0x34   :  { %v3153_v38 = vld [vmem:[#allocation2 + $0x1c0] ss:$16 sps:$4 sm:$0xff]   ;;  %v3154_v39 = vld [vmem:[#allocation2 + $0x1c8] ss:$16 sps:$4 sm:$0xff]   ;;  %v3155_v40 = vld [vmem:[#allocation2 + $0x1a4] ss:$16 sps:$4 sm:$0xff]  }
  0x35   :  { %719 = vmatpush1.bf16.msra.mxu0 %v3117_v14  ;;  %760 = vmatpush1.bf16.msra.mxu1 %v3118_v15  ;;  %v3157_v41 = vld [vmem:[#allocation2 + $0x1ac] ss:$16 sps:$4 sm:$0xff]   ;;  %v3159_v42 = vld [vmem:[#allocation2 + $0x1a0] ss:$16 sps:$4 sm:$0xff]   ;;  %v3160_v43 = vld [vmem:[#allocation2 + $0x1a8] ss:$16 sps:$4 sm:$0xff]  }
  0x36   :  { %720 = vmatprep.subr.bf16.mxu0 %v3119_v16  ;;  %761 = vmatprep.subr.bf16.mxu1 %v3121_v17  ;;  %v3161_v44 = vld [vmem:[#allocation2 + $0x184] ss:$16 sps:$4 sm:$0xff]   ;;  %v3163_v45 = vld [vmem:[#allocation2 + $0x18c] ss:$16 sps:$4 sm:$0xff]   ;;  %v3165_v47 = vld [vmem:[#allocation2 + $0x180] ss:$16 sps:$4 sm:$0xff]  }
  0x37   :  { %v2761_v46 = vld.sshfl [vmem:[%s3715_s0] sm:$0x33 pattern:$0x76325410]  ;;  %v3166_v48 = vld [vmem:[#allocation2 + $0x188] ss:$16 sps:$4 sm:$0xff]  }
  0x38   :  { %v365_v49 = vcombine.high %v2761_v46, %v2761_v46  ;;  %v3167_v50 = vld [vmem:[#allocation2 + $0x164] ss:$16 sps:$4 sm:$0xff]   ;;  %v3169_v51 = vld [vmem:[#allocation2 + $0x16c] ss:$16 sps:$4 sm:$0xff]   ;;  %v3171_v53 = vld [vmem:[#allocation2 + $0x160] ss:$16 sps:$4 sm:$0xff]   ;;  %v368_v5 = vpack.c.bf16 %v2761_v46, %v2761_v46 }
  0x39   :  { %721 = vmatpush1.bf16.msra.mxu0 %v3123_v18  ;;  %762 = vmatpush1.bf16.msra.mxu1 %v3124_v19  ;;  %v3172_v54 = vld [vmem:[#allocation2 + $0x168] ss:$16 sps:$4 sm:$0xff]   ;;  %v3173_v55 = vld [vmem:[#allocation2 + $0x144] ss:$16 sps:$4 sm:$0xff]   ;;  %v3175_v56 = vld [vmem:[#allocation2 + $0x14c] ss:$16 sps:$4 sm:$0xff]  }
  0x3a   :  { %722 = vmatprep.subr.bf16.mxu0 %v3125_v20  ;;  %763 = vmatprep.subr.bf16.mxu1 %v3127_v21  ;;  %v369_v52 = vpack.c.bf16 %v365_v49, %v365_v49  ;;  %v3177_v57 = vld [vmem:[#allocation2 + $0x140] ss:$16 sps:$4 sm:$0xff]   ;;  %v3178_v58 = vld [vmem:[#allocation2 + $0x148] ss:$16 sps:$4 sm:$0xff]   ;;  %v3179_v59 = vld [vmem:[#allocation2 + $0x124] ss:$16 sps:$4 sm:$0xff]  }
  0x3b   :  { %v3181_v60 = vld [vmem:[#allocation2 + $0x12c] ss:$16 sps:$4 sm:$0xff]   ;;  %v3183_v61 = vld [vmem:[#allocation2 + $0x120] ss:$16 sps:$4 sm:$0xff]   ;;  %v3184_v62 = vld [vmem:[#allocation2 + $0x128] ss:$16 sps:$4 sm:$0xff]  }
  0x3c   :  { %744 = vmatprep.mubr.bf16.mxu0 %v369_v52  ;;  %785 = vmatprep.mubr.bf16.mxu1 %v369_v52  ;;  %v3185_v63 = vld [vmem:[#allocation2 + $0x104] ss:$16 sps:$4 sm:$0xff]   ;;  %v3187_v0 = vld [vmem:[#allocation2 + $0x10c] ss:$16 sps:$4 sm:$0xff]   ;;  %v3189_v1 = vld [vmem:[#allocation2 + $0x100] ss:$16 sps:$4 sm:$0xff]  }
  0x3d   :  { %723 = vmatpush1.bf16.msra.mxu0 %v3129_v22  ;;  %764 = vmatpush1.bf16.msra.mxu1 %v3130_v23  ;;  %v3190_v2 = vld [vmem:[#allocation2 + $0x108] ss:$16 sps:$4 sm:$0xff]   ;;  %v3193_v3 = vld [vmem:[#allocation2 + $0x2e4] ss:$16 sps:$4 sm:$0xff]   ;;  %v3191_v6 = vld [vmem:[#allocation2 + $0x2e0] ss:$16 sps:$4 sm:$0xff]  }
  0x3e   :  { %724 = vmatprep.subr.bf16.mxu0 %v3131_v24  ;;  %765 = vmatprep.subr.bf16.mxu1 %v3133_v25  ;;  %v3196_v4 = vld [vmem:[#allocation2 + $0x4e4] ss:$16 sps:$4 sm:$0xff]   ;;  %v3194_v7 = vld [vmem:[#allocation2 + $0x4e0] ss:$16 sps:$4 sm:$0xff]   ;;  %vm1217_vm0 = vcmask 1041408   ;;  %vm3596_vm1 = vmmov 0  }
  0x3f   :  { %v3199_v8 = vld [vmem:[#allocation2 + $0x2c4] ss:$16 sps:$4 sm:$0xff]   ;;  %v3197_v10 = vld [vmem:[#allocation2 + $0x2c0] ss:$16 sps:$4 sm:$0xff]   ;;  %vm1708_vm2 = vcmask 130048   ;;  %vm1675_vm6 = vcmask 254976  }
  0x40   :  { %v3202_v9 = vld [vmem:[#allocation2 + $0x4c4] ss:$16 sps:$4 sm:$0xff]   ;;  %v3200_v11 = vld [vmem:[#allocation2 + $0x4c0] ss:$16 sps:$4 sm:$0xff]  }
  0x41   :  { %725 = vmatpush1.bf16.msra.mxu0 %v3135_v26  ;;  %766 = vmatpush1.bf16.msra.mxu1 %v3136_v27  ;;  %v3205_v12 = vld [vmem:[#allocation2 + $0x2a4] ss:$16 sps:$4 sm:$0xff]   ;;  %v3203_v14 = vld [vmem:[#allocation2 + $0x2a0] ss:$16 sps:$4 sm:$0xff]  }
  0x42   :  { %726 = vmatprep.subr.bf16.mxu0 %v3137_v28  ;;  %767 = vmatprep.subr.bf16.mxu1 %v3139_v29  ;;  %v3208_v13 = vld [vmem:[#allocation2 + $0x4a4] ss:$16 sps:$4 sm:$0xff]   ;;  %v3206_v15 = vld [vmem:[#allocation2 + $0x4a0] ss:$16 sps:$4 sm:$0xff]  }
  0x43   :  { %v3211_v16 = vld [vmem:[#allocation2 + $0x284] ss:$16 sps:$4 sm:$0xff]   ;;  %v3209_v18 = vld [vmem:[#allocation2 + $0x280] ss:$16 sps:$4 sm:$0xff]  }
  0x44   :  { %v3214_v17 = vld [vmem:[#allocation2 + $0x484] ss:$16 sps:$4 sm:$0xff]   ;;  %v3212_v19 = vld [vmem:[#allocation2 + $0x480] ss:$16 sps:$4 sm:$0xff]  }
  0x45   :  { %727 = vmatpush1.bf16.msra.mxu0 %v3141_v30  ;;  %768 = vmatpush1.bf16.msra.mxu1 %v3142_v31  ;;  %v3217_v20 = vld [vmem:[#allocation2 + $0x264] ss:$16 sps:$4 sm:$0xff]   ;;  %v3215_v22 = vld [vmem:[#allocation2 + $0x260] ss:$16 sps:$4 sm:$0xff]  }
  0x46   :  { %728 = vmatprep.subr.bf16.mxu0 %v3143_v32  ;;  %769 = vmatprep.subr.bf16.mxu1 %v3145_v33  ;;  %v3220_v21 = vld [vmem:[#allocation2 + $0x464] ss:$16 sps:$4 sm:$0xff]   ;;  %v3218_v23 = vld [vmem:[#allocation2 + $0x460] ss:$16 sps:$4 sm:$0xff]  }
  0x47   :  { %v3223_v24 = vld [vmem:[#allocation2 + $0x244] ss:$16 sps:$4 sm:$0xff]   ;;  %v3221_v26 = vld [vmem:[#allocation2 + $0x240] ss:$16 sps:$4 sm:$0xff]  }
  0x48   :  { %v3226_v25 = vld [vmem:[#allocation2 + $0x444] ss:$16 sps:$4 sm:$0xff]   ;;  %v3224_v27 = vld [vmem:[#allocation2 + $0x440] ss:$16 sps:$4 sm:$0xff]  }
  0x49   :  { %729 = vmatpush2.bf16.msra.mxu0 %v3147_v34  ;;  %770 = vmatpush2.bf16.msra.mxu1 %v3148_v35  ;;  %v3229_v28 = vld [vmem:[#allocation2 + $0x224] ss:$16 sps:$4 sm:$0xff]   ;;  %v3227_v30 = vld [vmem:[#allocation2 + $0x220] ss:$16 sps:$4 sm:$0xff]  }
  0x4a   :  { %730 = vmatprep.subr.bf16.mxu0 %v3149_v36  ;;  %771 = vmatprep.subr.bf16.mxu1 %v3151_v37  ;;  %v3232_v29 = vld [vmem:[#allocation2 + $0x424] ss:$16 sps:$4 sm:$0xff]   ;;  %v3230_v31 = vld [vmem:[#allocation2 + $0x420] ss:$16 sps:$4 sm:$0xff]  }
  0x4b   :  { %v3235_v32 = vld [vmem:[#allocation2 + $0x204] ss:$16 sps:$4 sm:$0xff]   ;;  %v3233_v34 = vld [vmem:[#allocation2 + $0x200] ss:$16 sps:$4 sm:$0xff]  }
  0x4c   :  { %v3238_v33 = vld [vmem:[#allocation2 + $0x404] ss:$16 sps:$4 sm:$0xff]   ;;  %v3236_v35 = vld [vmem:[#allocation2 + $0x400] ss:$16 sps:$4 sm:$0xff]  }
  0x4d   :  { %731 = vmatpush2.bf16.msra.mxu0 %v3153_v38  ;;  %772 = vmatpush2.bf16.msra.mxu1 %v3154_v39  ;;  %v3241_v36 = vld [vmem:[#allocation2 + $0x3e4] ss:$16 sps:$4 sm:$0xff]   ;;  %v3239_v38 = vld [vmem:[#allocation2 + $0x3e0] ss:$16 sps:$4 sm:$0xff]  }
  0x4e   :  { %732 = vmatprep.subr.bf16.mxu0 %v3155_v40  ;;  %773 = vmatprep.subr.bf16.mxu1 %v3157_v41  ;;  %v3244_v37 = vld [vmem:[#allocation2 + $0x5e4] ss:$16 sps:$4 sm:$0xff]   ;;  %v3242_v39 = vld [vmem:[#allocation2 + $0x5e0] ss:$16 sps:$4 sm:$0xff]  }
  0x4f   :  { %v3247_v40 = vld [vmem:[#allocation2 + $0x3c4] ss:$16 sps:$4 sm:$0xff]   ;;  %v3251_v46 = vld [vmem:[#allocation2 + $0x3a0] ss:$16 sps:$4 sm:$0xff]  }
  0x50   :  { %v3250_v41 = vld [vmem:[#allocation2 + $0x5c4] ss:$16 sps:$4 sm:$0xff]  }
  0x51   :  { %733 = vmatpush2.bf16.msra.mxu0 %v3159_v42  ;;  %774 = vmatpush2.bf16.msra.mxu1 %v3160_v43  ;;  %v3245_v42 = vld [vmem:[#allocation2 + $0x3c0] ss:$16 sps:$4 sm:$0xff]   ;;  %v3262_v49 = vld [vmem:[#allocation2 + $0x584] ss:$16 sps:$4 sm:$0xff]  }
  0x52   :  { %734 = vmatprep.subr.bf16.mxu0 %v3161_v44  ;;  %775 = vmatprep.subr.bf16.mxu1 %v3163_v45  ;;  %v3248_v43 = vld [vmem:[#allocation2 + $0x5c0] ss:$16 sps:$4 sm:$0xff]   ;;  %v3253_v44 = vld [vmem:[#allocation2 + $0x3a4] ss:$16 sps:$4 sm:$0xff]  }
  0x53   :  { %v3256_v45 = vld [vmem:[#allocation2 + $0x5a4] ss:$16 sps:$4 sm:$0xff]  }
  0x54   :  { %v3265_v52 = vld [vmem:[#allocation2 + $0x364] ss:$16 sps:$4 sm:$0xff]  }
  0x55   :  { %735 = vmatpush2.bf16.msra.mxu0 %v3165_v47  ;;  %776 = vmatpush2.bf16.msra.mxu1 %v3166_v48  ;;  %v3254_v47 = vld [vmem:[#allocation2 + $0x5a0] ss:$16 sps:$4 sm:$0xff]   ;;  %v3259_v48 = vld [vmem:[#allocation2 + $0x384] ss:$16 sps:$4 sm:$0xff]  }
  0x56   :  { %736 = vmatprep.subr.bf16.mxu0 %v3167_v50  ;;  %777 = vmatprep.subr.bf16.mxu1 %v3169_v51  ;;  %v3257_v50 = vld [vmem:[#allocation2 + $0x380] ss:$16 sps:$4 sm:$0xff]  }
  0x57   :  { %v3260_v51 = vld [vmem:[#allocation2 + $0x580] ss:$16 sps:$4 sm:$0xff]  }
  0x59   :  { %737 = vmatpush2.bf16.msra.mxu0 %v3171_v53  ;;  %778 = vmatpush2.bf16.msra.mxu1 %v3172_v54  ;;  %v3268_v53 = vld [vmem:[#allocation2 + $0x564] ss:$16 sps:$4 sm:$0xff]   ;;  %v3263_v54 = vld [vmem:[#allocation2 + $0x360] ss:$16 sps:$4 sm:$0xff]  }
  0x5a   :  { %738 = vmatprep.subr.bf16.mxu0 %v3173_v55  ;;  %779 = vmatprep.subr.bf16.mxu1 %v3175_v56  ;;  %v3266_v55 = vld [vmem:[#allocation2 + $0x560] ss:$16 sps:$4 sm:$0xff]   ;;  %v3271_v56 = vld [vmem:[#allocation2 + $0x344] ss:$16 sps:$4 sm:$0xff]  }
  0x5d   :  { %739 = vmatpush2.bf16.msra.mxu0 %v3177_v57  ;;  %780 = vmatpush2.bf16.msra.mxu1 %v3178_v58  ;;  %v3274_v57 = vld [vmem:[#allocation2 + $0x544] ss:$16 sps:$4 sm:$0xff]   ;;  %v3269_v58 = vld [vmem:[#allocation2 + $0x340] ss:$16 sps:$4 sm:$0xff]  }
  0x5e   :  { %740 = vmatprep.subr.bf16.mxu0 %v3179_v59  ;;  %781 = vmatprep.subr.bf16.mxu1 %v3181_v60  ;;  %v3272_v59 = vld [vmem:[#allocation2 + $0x540] ss:$16 sps:$4 sm:$0xff]   ;;  %v3277_v60 = vld [vmem:[#allocation2 + $0x324] ss:$16 sps:$4 sm:$0xff]  }
  0x61   :  { %741 = vmatpush2.bf16.msra.mxu0 %v3183_v61  ;;  %782 = vmatpush2.bf16.msra.mxu1 %v3184_v62  ;;  %v3280_v61 = vld [vmem:[#allocation2 + $0x524] ss:$16 sps:$4 sm:$0xff]   ;;  %v3275_v62 = vld [vmem:[#allocation2 + $0x320] ss:$16 sps:$4 sm:$0xff]  }
  0x62   :  { %742 = vmatprep.subr.bf16.mxu0 %v3185_v63  ;;  %783 = vmatprep.subr.bf16.mxu1 %v3187_v0  ;;  %v3278_v63 = vld [vmem:[#allocation2 + $0x520] ss:$16 sps:$4 sm:$0xff]   ;;  %v3283_v0 = vld [vmem:[#allocation2 + $0x304] ss:$16 sps:$4 sm:$0xff]  }
  0x65   :  { %743 = vmatpush2.bf16.msra.mxu0 %v3189_v1  ;;  %784 = vmatpush2.bf16.msra.mxu1 %v3190_v2  ;;  %v3286_v1 = vld [vmem:[#allocation2 + $0x504] ss:$16 sps:$4 sm:$0xff]   ;;  %v3281_v2 = vld [vmem:[#allocation2 + $0x300] ss:$16 sps:$4 sm:$0xff]  }
  0x66   :  { %1135 = vmatprep.subr.bf16.mxu0 %v3193_v3  ;;  %1176 = vmatprep.subr.bf16.mxu1 %v3196_v4  ;;  %v3284_v3 = vld [vmem:[#allocation2 + $0x500] ss:$16 sps:$4 sm:$0xff]   ;;  %v1263_v4 = vld [vmem:[#allocation6 + $0xf8] sm:$0xff] }
  0x68   :  { %745 = vmatmul.mubr.bf16.vlgmr.msra.gmra.mxu0 %v368_v5  ;;  %786 = vmatmul.mubr.bf16.vlgmr.msra.gmra.mxu1 %v368_v5  ;;  %v372_v5 = vlaneseq }
  0x69   :  { %1136 = vmatpush1.bf16.msra.mxu0 %v3191_v6  ;;  %1177 = vmatpush1.bf16.msra.mxu1 %v3194_v7 }
  0x6a   :  { %1137 = vmatprep.subr.bf16.mxu0 %v3199_v8  ;;  %1178 = vmatprep.subr.bf16.mxu1 %v3202_v9  ;;  %v3643_v6 = vshrl.u32 %v372_v5, 7  ;;  %v370_v9 = vld [vmem:[#allocation4] ss:$8 sm:$0xf] }
  0x6c   :  { %v3646_v7 = vsub.s32 0, %v3643_v6  ;;  %v382_v8 = vsub.s32 2, %v3643_v6 }
  0x6d   :  { %1138 = vmatpush1.bf16.msra.mxu0 %v3197_v10  ;;  %1179 = vmatpush1.bf16.msra.mxu1 %v3200_v11  ;;  %v3650_v10 = vsub.s32 1, %v3643_v6  ;;  %v386_v11 = vsub.s32 3, %v3643_v6 }
  0x6e   :  { %1139 = vmatprep.subr.bf16.mxu0 %v3205_v12  ;;  %1180 = vmatprep.subr.bf16.mxu1 %v3208_v13  ;;  %v375_v12 = vrot.slane %v370_v9, %v3646_v7  ;;  %v383_v13 = vrot.slane %v370_v9, %v382_v8 }
  0x71   :  { %1140 = vmatpush1.bf16.msra.mxu0 %v3203_v14  ;;  %1181 = vmatpush1.bf16.msra.mxu1 %v3206_v15  ;;  %v379_v14 = vrot.slane %v370_v9, %v3650_v10  ;;  %v387_v15 = vrot.slane %v370_v9, %v386_v11  ;;  %v1293_v9 = vld [vmem:[#allocation6 + $0x1e8] sm:$0xff] }
  0x72   :  { %1141 = vmatprep.subr.bf16.mxu0 %v3211_v16  ;;  %1182 = vmatprep.subr.bf16.mxu1 %v3214_v17 }
  0x75   :  { %1142 = vmatpush1.bf16.msra.mxu0 %v3209_v18  ;;  %1183 = vmatpush1.bf16.msra.mxu1 %v3212_v19 }
  0x76   :  { %1143 = vmatprep.subr.bf16.mxu0 %v3217_v20  ;;  %1184 = vmatprep.subr.bf16.mxu1 %v3220_v21 }
  0x79   :  { %1144 = vmatpush1.bf16.msra.mxu0 %v3215_v22  ;;  %1185 = vmatpush1.bf16.msra.mxu1 %v3218_v23 }
  0x7a   :  { %1145 = vmatprep.subr.bf16.mxu0 %v3223_v24  ;;  %1186 = vmatprep.subr.bf16.mxu1 %v3226_v25 }
  0x7d   :  { %1146 = vmatpush1.bf16.msra.mxu0 %v3221_v26  ;;  %1187 = vmatpush1.bf16.msra.mxu1 %v3224_v27 }
  0x7e   :  { %1147 = vmatprep.subr.bf16.mxu0 %v3229_v28  ;;  %1188 = vmatprep.subr.bf16.mxu1 %v3232_v29 }
  0x81   :  { %1148 = vmatpush1.bf16.msra.mxu0 %v3227_v30  ;;  %1189 = vmatpush1.bf16.msra.mxu1 %v3230_v31 }
  0x82   :  { %1149 = vmatprep.subr.bf16.mxu0 %v3235_v32  ;;  %1190 = vmatprep.subr.bf16.mxu1 %v3238_v33 }
  0x85   :  { %1150 = vmatpush1.bf16.msra.mxu0 %v3233_v34  ;;  %1191 = vmatpush1.bf16.msra.mxu1 %v3236_v35 }
  0x86   :  { %1151 = vmatprep.subr.bf16.mxu0 %v3241_v36  ;;  %1192 = vmatprep.subr.bf16.mxu1 %v3244_v37  ;;  %v1262_v36 = vld [vmem:[#allocation6 + $0xf0] sm:$0xff]  ;;  %v1261_v37 = vld [vmem:[#allocation6 + $0xe8] sm:$0xff] }
  0x89   :  { %1152 = vmatpush2.bf16.msra.mxu0 %v3239_v38  ;;  %1193 = vmatpush2.bf16.msra.mxu1 %v3242_v39  ;;  %v1260_v38 = vld [vmem:[#allocation6 + $0xe0] sm:$0xff]  ;;  %v1259_v39 = vld [vmem:[#allocation6 + $0xd8] sm:$0xff] }
  0x8a   :  { %1153 = vmatprep.subr.bf16.mxu0 %v3247_v40  ;;  %1194 = vmatprep.subr.bf16.mxu1 %v3250_v41  ;;  %v1258_v40 = vld [vmem:[#allocation6 + $0xd0] sm:$0xff]  ;;  %v1257_v41 = vld [vmem:[#allocation6 + $0xc8] sm:$0xff] }
  0x8d   :  { %1154 = vmatpush2.bf16.msra.mxu0 %v3245_v42  ;;  %1195 = vmatpush2.bf16.msra.mxu1 %v3248_v43  ;;  %v1256_v42 = vld [vmem:[#allocation6 + $0xc0] sm:$0xff]  ;;  %v1255_v43 = vld [vmem:[#allocation6 + $0xb8] sm:$0xff] }
  0x8e   :  { %1155 = vmatprep.subr.bf16.mxu0 %v3253_v44  ;;  %1196 = vmatprep.subr.bf16.mxu1 %v3256_v45  ;;  %v1254_v44 = vld [vmem:[#allocation6 + $0xb0] sm:$0xff]  ;;  %v1253_v45 = vld [vmem:[#allocation6 + $0xa8] sm:$0xff] }
  0x91   :  { %1156 = vmatpush2.bf16.msra.mxu0 %v3251_v46  ;;  %1197 = vmatpush2.bf16.msra.mxu1 %v3254_v47  ;;  %v1252_v46 = vld [vmem:[#allocation6 + $0xa0] sm:$0xff]  ;;  %v1251_v47 = vld [vmem:[#allocation6 + $0x98] sm:$0xff] }
  0x92   :  { %1157 = vmatprep.subr.bf16.mxu0 %v3259_v48  ;;  %1198 = vmatprep.subr.bf16.mxu1 %v3262_v49  ;;  %v1250_v48 = vld [vmem:[#allocation6 + $0x90] sm:$0xff]  ;;  %v1249_v49 = vld [vmem:[#allocation6 + $0x88] sm:$0xff] }
  0x95   :  { %1158 = vmatpush2.bf16.msra.mxu0 %v3257_v50  ;;  %1199 = vmatpush2.bf16.msra.mxu1 %v3260_v51  ;;  %v1248_v50 = vld [vmem:[#allocation6 + $0x80] sm:$0xff]  ;;  %v1247_v51 = vld [vmem:[#allocation6 + $0x78] sm:$0xff] }
  0x96   :  { %1159 = vmatprep.subr.bf16.mxu0 %v3265_v52  ;;  %1200 = vmatprep.subr.bf16.mxu1 %v3268_v53  ;;  %v1246_v52 = vld [vmem:[#allocation6 + $0x70] sm:$0xff]  ;;  %v1245_v53 = vld [vmem:[#allocation6 + $0x68] sm:$0xff] }
  0x99   :  { %1160 = vmatpush2.bf16.msra.mxu0 %v3263_v54  ;;  %1201 = vmatpush2.bf16.msra.mxu1 %v3266_v55  ;;  %v1244_v54 = vld [vmem:[#allocation6 + $0x60] sm:$0xff]  ;;  %v1243_v55 = vld [vmem:[#allocation6 + $0x58] sm:$0xff] }
  0x9a   :  { %1161 = vmatprep.subr.bf16.mxu0 %v3271_v56  ;;  %1202 = vmatprep.subr.bf16.mxu1 %v3274_v57  ;;  %v1242_v56 = vld [vmem:[#allocation6 + $0x50] sm:$0xff]  ;;  %v1241_v57 = vld [vmem:[#allocation6 + $0x48] sm:$0xff] }
  0x9d   :  { %1162 = vmatpush2.bf16.msra.mxu0 %v3269_v58  ;;  %1203 = vmatpush2.bf16.msra.mxu1 %v3272_v59  ;;  %v1240_v58 = vld [vmem:[#allocation6 + $0x40] sm:$0xff]  ;;  %v1239_v59 = vld [vmem:[#allocation6 + $0x38] sm:$0xff] }
  0x9e   :  { %1163 = vmatprep.subr.bf16.mxu0 %v3277_v60  ;;  %1204 = vmatprep.subr.bf16.mxu1 %v3280_v61  ;;  %v1238_v60 = vld [vmem:[#allocation6 + $0x30] sm:$0xff]  ;;  %v1237_v61 = vld [vmem:[#allocation6 + $0x28] sm:$0xff] }
  0xa1   :  { %1164 = vmatpush2.bf16.msra.mxu0 %v3275_v62  ;;  %1205 = vmatpush2.bf16.msra.mxu1 %v3278_v63  ;;  %v1236_v62 = vld [vmem:[#allocation6 + $0x20] sm:$0xff]  ;;  %v1235_v63 = vld [vmem:[#allocation6 + $0x18] sm:$0xff] }
  0xa2   :  { %1165 = vmatprep.subr.bf16.mxu0 %v3283_v0  ;;  %1206 = vmatprep.subr.bf16.mxu1 %v3286_v1  ;;  %v1234_v0 = vld [vmem:[#allocation6 + $0x10] sm:$0xff]  ;;  %v1233_v1 = vld [vmem:[#allocation6 + $0x8] sm:$0xff] }
  0xa5   :  { %1166 = vmatpush2.bf16.msra.mxu0 %v3281_v2  ;;  %1207 = vmatpush2.bf16.msra.mxu1 %v3284_v3  ;;  %v1232_v2 = vld [vmem:[#allocation6] sm:$0xff]  ;;  %v1295_v3 = vld [vmem:[#allocation6 + $0x1f8] sm:$0xff] }
  0xa6   :  { %1296 = vmatprep.subr.mxu0 %v1263_v4  ;;  %1395 = vmatprep.subr.mxu1 %v1263_v4  ;;  %v1294_v4 = vld [vmem:[#allocation6 + $0x1f0] sm:$0xff] }
 0x128   :  { %v746_v16 = vpop.f32.mrf.mxu0  ;;  %v787_v17 = vpop.f32.mrf.mxu1 }
 0x129   :  { %v747_v18 = vadd.f32 %v746_v16, %v375_v12  ;;  %v788_v19 = vadd.f32 %v787_v17, %v383_v13  ;;  %v1292_v12 = vld [vmem:[#allocation6 + $0x1e0] sm:$0xff]  ;;  %v1291_v13 = vld [vmem:[#allocation6 + $0x1d8] sm:$0xff] }
 0x12a   :  { %v748_v20 = vpop.f32.mrf.mxu0  ;;  %v789_v21 = vpop.f32.mrf.mxu1  ;;  %v1288_v16 = vld [vmem:[#allocation6 + $0x1c0] sm:$0xff]  ;;  %v1287_v17 = vld [vmem:[#allocation6 + $0x1b8] sm:$0xff] }
 0x12b   :  { %v796_v22 = vmax.f32 %v788_v19, 0.0  ;;  %v749_v23 = vadd.f32 %v748_v20, %v379_v14  ;;  %v790_v24 = vadd.f32 %v789_v21, %v387_v15  ;;  %v794_v25 = vmax.f32 %v747_v18, 0.0  ;;  %v1290_v14 = vld [vmem:[#allocation6 + $0x1d0] sm:$0xff]  ;;  %v1289_v15 = vld [vmem:[#allocation6 + $0x1c8] sm:$0xff]  ;;  %v1284_v20 = vld [vmem:[#allocation6 + $0x1a0] sm:$0xff] }
 0x12c   :  { %v750_v26 = vpop.f32.mrf.mxu0  ;;  %v791_v27 = vpop.f32.mrf.mxu1  ;;  %v1286_v18 = vld [vmem:[#allocation6 + $0x1b0] sm:$0xff]  ;;  %v1285_v19 = vld [vmem:[#allocation6 + $0x1a8] sm:$0xff]  ;;  %v1283_v21 = vld [vmem:[#allocation6 + $0x198] sm:$0xff] }
 0x12d   :  { %v795_v28 = vmax.f32 %v749_v23, 0.0  ;;  %v797_v29 = vmax.f32 %v790_v24, 0.0  ;;  %v800_v30 = vpack.c.bf16 %v796_v22, %v796_v22  ;;  %v798_v35 = vpack.c.bf16 %v794_v25, %v794_v25  ;;  %v1282_v22 = vld [vmem:[#allocation6 + $0x190] sm:$0xff]  ;;  %v1281_v23 = vld [vmem:[#allocation6 + $0x188] sm:$0xff]  ;;  %v1280_v24 = vld [vmem:[#allocation6 + $0x180] sm:$0xff] }
 0x12e   :  { %v751_v31 = vpop.f32.mrf.mxu0  ;;  %v792_v32 = vpop.f32.mrf.mxu1  ;;  %v1279_v25 = vld [vmem:[#allocation6 + $0x178] sm:$0xff]  ;;  %v1278_v26 = vld [vmem:[#allocation6 + $0x170] sm:$0xff]  ;;  %v1277_v27 = vld [vmem:[#allocation6 + $0x168] sm:$0xff] }
 0x12f   :  { %v799_v33 = vpack.c.bf16 %v795_v28, %v795_v28  ;;  %v801_v34 = vpack.c.bf16 %v797_v29, %v797_v29  ;;  %v1276_v28 = vld [vmem:[#allocation6 + $0x160] sm:$0xff]  ;;  %v1275_v29 = vld [vmem:[#allocation6 + $0x158] sm:$0xff]  ;;  %v1273_v31 = vld [vmem:[#allocation6 + $0x148] sm:$0xff] }
 0x130   :  { %v1272_v32 = vld [vmem:[#allocation6 + $0x140] sm:$0xff] }
 0x131   :  { %1167 = vmatprep.mubr.bf16.mxu0 %v799_v33  ;;  %1208 = vmatprep.mubr.bf16.mxu1 %v801_v34  ;;  %v1271_v33 = vld [vmem:[#allocation6 + $0x138] sm:$0xff]  ;;  %v1270_v34 = vld [vmem:[#allocation6 + $0x130] sm:$0xff] }
 0x132   :  { %1168 = vmatmul.mubr.bf16.vlgmr.msra.gmra.mxu0 %v798_v35  ;;  %1209 = vmatmul.mubr.bf16.vlgmr.msra.gmra.mxu1 %v800_v30  ;;  %v1274_v30 = vld [vmem:[#allocation6 + $0x150] sm:$0xff]  ;;  %v1269_v35 = vld [vmem:[#allocation6 + $0x128] sm:$0xff] }
 0x133   :  { %1297 = vmatpush1.msra.mxu0 %v1262_v36  ;;  %1396 = vmatpush1.msra.mxu1 %v1262_v36  ;;  %v1268_v36 = vld [vmem:[#allocation6 + $0x120] sm:$0xff] }
 0x134   :  { %1298 = vmatprep.subr.mxu0 %v1261_v37  ;;  %1397 = vmatprep.subr.mxu1 %v1261_v37  ;;  %v1267_v37 = vld [vmem:[#allocation6 + $0x118] sm:$0xff] }
 0x135   :  { %1299 = vmatpush1.msra.mxu0 %v1260_v38  ;;  %1398 = vmatpush1.msra.mxu1 %v1260_v38  ;;  %v1266_v38 = vld [vmem:[#allocation6 + $0x110] sm:$0xff] }
 0x136   :  { %1300 = vmatprep.subr.mxu0 %v1259_v39  ;;  %1399 = vmatprep.subr.mxu1 %v1259_v39  ;;  %v1265_v39 = vld [vmem:[#allocation6 + $0x108] sm:$0xff] }
 0x137   :  { %1301 = vmatpush1.msra.mxu0 %v1258_v40  ;;  %1400 = vmatpush1.msra.mxu1 %v1258_v40  ;;  %v1264_v40 = vld [vmem:[#allocation6 + $0x100] sm:$0xff] }
 0x138   :  { %1302 = vmatprep.subr.mxu0 %v1257_v41  ;;  %1401 = vmatprep.subr.mxu1 %v1257_v41  ;;  %v803_v41 = vld [vmem:[#allocation4 + $0x1] ss:$8 sm:$0x3] }
 0x139   :  { %1303 = vmatpush1.msra.mxu0 %v1256_v42  ;;  %1402 = vmatpush1.msra.mxu1 %v1256_v42  ;;  %v808_v42 = vrot.slane %v803_v41, %v3646_v7 }
 0x13a   :  { %1304 = vmatprep.subr.mxu0 %v1255_v43  ;;  %1403 = vmatprep.subr.mxu1 %v1255_v43  ;;  %v812_v43 = vrot.slane %v803_v41, %v3650_v10  ;;  %v3292_v41 = vld [vmem:[#allocation2 + $0x6a0] ss:$16 sps:$4 sm:$0xff]  }
 0x13b   :  { %1305 = vmatpush1.msra.mxu0 %v1254_v44  ;;  %1404 = vmatpush1.msra.mxu1 %v1254_v44 }
 0x13c   :  { %1306 = vmatprep.subr.mxu0 %v1253_v45  ;;  %1405 = vmatprep.subr.mxu1 %v1253_v45 }
 0x13d   :  { %1307 = vmatpush1.msra.mxu0 %v1252_v46  ;;  %1406 = vmatpush1.msra.mxu1 %v1252_v46 }
 0x13e   :  { %1308 = vmatprep.subr.mxu0 %v1251_v47  ;;  %1407 = vmatprep.subr.mxu1 %v1251_v47 }
 0x13f   :  { %1309 = vmatpush1.msra.mxu0 %v1250_v48  ;;  %1408 = vmatpush1.msra.mxu1 %v1250_v48 }
 0x140   :  { %1310 = vmatprep.subr.mxu0 %v1249_v49  ;;  %1409 = vmatprep.subr.mxu1 %v1249_v49 }
 0x141   :  { %1311 = vmatpush1.msra.mxu0 %v1248_v50  ;;  %1410 = vmatpush1.msra.mxu1 %v1248_v50 }
 0x142   :  { %1312 = vmatprep.subr.mxu0 %v1247_v51  ;;  %1411 = vmatprep.subr.mxu1 %v1247_v51 }
 0x143   :  { %1313 = vmatpush1.msra.mxu0 %v1246_v52  ;;  %1412 = vmatpush1.msra.mxu1 %v1246_v52 }
 0x144   :  { %1314 = vmatprep.subr.mxu0 %v1245_v53  ;;  %1413 = vmatprep.subr.mxu1 %v1245_v53 }
 0x145   :  { %1315 = vmatpush1.msra.mxu0 %v1244_v54  ;;  %1414 = vmatpush1.msra.mxu1 %v1244_v54 }
 0x146   :  { %1316 = vmatprep.subr.mxu0 %v1243_v55  ;;  %1415 = vmatprep.subr.mxu1 %v1243_v55 }
 0x147   :  { %1317 = vmatpush1.msra.mxu0 %v1242_v56  ;;  %1416 = vmatpush1.msra.mxu1 %v1242_v56 }
 0x148   :  { %1318 = vmatprep.subr.mxu0 %v1241_v57  ;;  %1417 = vmatprep.subr.mxu1 %v1241_v57 }
 0x149   :  { %1319 = vmatpush1.msra.mxu0 %v1240_v58  ;;  %1418 = vmatpush1.msra.mxu1 %v1240_v58 }
 0x14a   :  { %1320 = vmatprep.subr.mxu0 %v1239_v59  ;;  %1419 = vmatprep.subr.mxu1 %v1239_v59 }
 0x14b   :  { %1321 = vmatpush1.msra.mxu0 %v1238_v60  ;;  %1420 = vmatpush1.msra.mxu1 %v1238_v60 }
 0x14c   :  { %1322 = vmatprep.subr.mxu0 %v1237_v61  ;;  %1421 = vmatprep.subr.mxu1 %v1237_v61 }
 0x14d   :  { %1323 = vmatpush1.msra.mxu0 %v1236_v62  ;;  %1422 = vmatpush1.msra.mxu1 %v1236_v62 }
 0x14e   :  { %1324 = vmatprep.subr.mxu0 %v1235_v63  ;;  %1423 = vmatprep.subr.mxu1 %v1235_v63 }
 0x14f   :  { %1325 = vmatpush1.msra.mxu0 %v1234_v0  ;;  %1424 = vmatpush1.msra.mxu1 %v1234_v0 }
 0x150   :  { %1326 = vmatprep.subr.mxu0 %v1233_v1  ;;  %1425 = vmatprep.subr.mxu1 %v1233_v1 }
 0x151   :  { %1327 = vmatpush1.msra.mxu0 %v1232_v2  ;;  %1426 = vmatpush1.msra.mxu1 %v1232_v2 }
 0x152   :  { %1328 = vmatprep.subr.mxu0 %v1295_v3  ;;  %1427 = vmatprep.subr.mxu1 %v1295_v3 }
 0x153   :  { %1329 = vmatpush2.msra.mxu0 %v1294_v4  ;;  %1428 = vmatpush2.msra.mxu1 %v1294_v4 }
 0x154   :  { %1330 = vmatprep.subr.mxu0 %v1293_v9  ;;  %1429 = vmatprep.subr.mxu1 %v1293_v9 }
 0x155   :  { %1331 = vmatpush2.msra.mxu0 %v1292_v12  ;;  %1430 = vmatpush2.msra.mxu1 %v1292_v12 }
 0x156   :  { %1332 = vmatprep.subr.mxu0 %v1291_v13  ;;  %1431 = vmatprep.subr.mxu1 %v1291_v13 }
 0x157   :  { %1333 = vmatpush2.msra.mxu0 %v1290_v14  ;;  %1432 = vmatpush2.msra.mxu1 %v1290_v14 }
 0x158   :  { %1334 = vmatprep.subr.mxu0 %v1289_v15  ;;  %1433 = vmatprep.subr.mxu1 %v1289_v15 }
 0x159   :  { %1335 = vmatpush2.msra.mxu0 %v1288_v16  ;;  %1434 = vmatpush2.msra.mxu1 %v1288_v16 }
 0x15a   :  { %1336 = vmatprep.subr.mxu0 %v1287_v17  ;;  %1435 = vmatprep.subr.mxu1 %v1287_v17 }
 0x15b   :  { %1337 = vmatpush2.msra.mxu0 %v1286_v18  ;;  %1436 = vmatpush2.msra.mxu1 %v1286_v18 }
 0x15c   :  { %1338 = vmatprep.subr.mxu0 %v1285_v19  ;;  %1437 = vmatprep.subr.mxu1 %v1285_v19 }
 0x15d   :  { %1339 = vmatpush2.msra.mxu0 %v1284_v20  ;;  %1438 = vmatpush2.msra.mxu1 %v1284_v20 }
 0x15e   :  { %1340 = vmatprep.subr.mxu0 %v1283_v21  ;;  %1439 = vmatprep.subr.mxu1 %v1283_v21 }
 0x15f   :  { %1341 = vmatpush2.msra.mxu0 %v1282_v22  ;;  %1440 = vmatpush2.msra.mxu1 %v1282_v22 }
 0x160   :  { %1342 = vmatprep.subr.mxu0 %v1281_v23  ;;  %1441 = vmatprep.subr.mxu1 %v1281_v23 }
 0x161   :  { %1343 = vmatpush2.msra.mxu0 %v1280_v24  ;;  %1442 = vmatpush2.msra.mxu1 %v1280_v24 }
 0x162   :  { %1344 = vmatprep.subr.mxu0 %v1279_v25  ;;  %1443 = vmatprep.subr.mxu1 %v1279_v25 }
 0x163   :  { %1345 = vmatpush2.msra.mxu0 %v1278_v26  ;;  %1444 = vmatpush2.msra.mxu1 %v1278_v26 }
 0x164   :  { %1346 = vmatprep.subr.mxu0 %v1277_v27  ;;  %1445 = vmatprep.subr.mxu1 %v1277_v27 }
 0x165   :  { %1347 = vmatpush2.msra.mxu0 %v1276_v28  ;;  %1446 = vmatpush2.msra.mxu1 %v1276_v28 }
 0x166   :  { %1348 = vmatprep.subr.mxu0 %v1275_v29  ;;  %1447 = vmatprep.subr.mxu1 %v1275_v29 }
 0x167   :  { %1349 = vmatpush2.msra.mxu0 %v1274_v30  ;;  %1448 = vmatpush2.msra.mxu1 %v1274_v30 }
 0x168   :  { %1350 = vmatprep.subr.mxu0 %v1273_v31  ;;  %1449 = vmatprep.subr.mxu1 %v1273_v31 }
 0x169   :  { %1351 = vmatpush2.msra.mxu0 %v1272_v32  ;;  %1450 = vmatpush2.msra.mxu1 %v1272_v32 }
 0x16a   :  { %1352 = vmatprep.subr.mxu0 %v1271_v33  ;;  %1451 = vmatprep.subr.mxu1 %v1271_v33 }
 0x16b   :  { %1353 = vmatpush2.msra.mxu0 %v1270_v34  ;;  %1452 = vmatpush2.msra.mxu1 %v1270_v34 }
 0x16c   :  { %1354 = vmatprep.subr.mxu0 %v1269_v35  ;;  %1453 = vmatprep.subr.mxu1 %v1269_v35 }
 0x16d   :  { %1355 = vmatpush2.msra.mxu0 %v1268_v36  ;;  %1454 = vmatpush2.msra.mxu1 %v1268_v36  ;;  %v3287_v36 = vld [vmem:[#allocation2 + $0x7e0] ss:$16 sps:$4 sm:$0xff]  }
 0x16e   :  { %1356 = vmatprep.subr.mxu0 %v1267_v37  ;;  %1455 = vmatprep.subr.mxu1 %v1267_v37  ;;  %v3288_v37 = vld [vmem:[#allocation2 + $0x6e0] ss:$16 sps:$4 sm:$0xff]  }
 0x16f   :  { %1357 = vmatpush2.msra.mxu0 %v1266_v38  ;;  %1456 = vmatpush2.msra.mxu1 %v1266_v38  ;;  %v3289_v38 = vld [vmem:[#allocation2 + $0x7c0] ss:$16 sps:$4 sm:$0xff]  }
 0x170   :  { %1358 = vmatprep.subr.mxu0 %v1265_v39  ;;  %1457 = vmatprep.subr.mxu1 %v1265_v39  ;;  %v3290_v39 = vld [vmem:[#allocation2 + $0x6c0] ss:$16 sps:$4 sm:$0xff]  }
 0x171   :  { %1359 = vmatpush2.msra.mxu0 %v1264_v40  ;;  %1458 = vmatpush2.msra.mxu1 %v1264_v40  ;;  %v3291_v40 = vld [vmem:[#allocation2 + $0x7a0] ss:$16 sps:$4 sm:$0xff]  }
 0x172   :  { %3045 = vmatprep.subr.bf16.mxu0 %v3287_v36 }
 0x1f2   :  { %v1169_v44 = vpop.f32.mrf.mxu0  ;;  %v1210_v45 = vpop.f32.mrf.mxu1 }
 0x1f3   :  { %v1170_v46 = vadd.f32 %v1169_v44, %v808_v42  ;;  %v3293_v42 = vld [vmem:[#allocation2 + $0x780] ss:$16 sps:$4 sm:$0xff]  }
 0x1f4   :  { %v1171_v47 = vpop.f32.mrf.mxu0  ;;  %v1212_v48 = vpop.f32.mrf.mxu1  ;;  %v3295_v44 = vld [vmem:[#allocation2 + $0x760] ss:$16 sps:$4 sm:$0xff]  }
 0x1f5   :  { %v1211_v49 = vadd.f32 %v1210_v45, %v1170_v46  ;;  %v1172_v50 = vadd.f32 %v1171_v47, %v812_v43  ;;  %v3294_v43 = vld [vmem:[#allocation2 + $0x680] ss:$16 sps:$4 sm:$0xff]  }
 0x1f6   :  { %v1173_v51 = vpop.f32.mrf.mxu0  ;;  %v1214_v52 = vpop.f32.mrf.mxu1  ;;  %v3296_v45 = vld [vmem:[#allocation2 + $0x660] ss:$16 sps:$4 sm:$0xff]  }
 0x1f7   :  { %v1218_v53 = vsel %vm1217_vm0, %v1211_v49, 0.0  ;;  %v1213_v54 = vadd.f32 %v1212_v48, %v1172_v50  ;;  %v3297_v46 = vld [vmem:[#allocation2 + $0x740] ss:$16 sps:$4 sm:$0xff]   ;;  %v3593_v52 = vmov 1983009808  }
 0x1f8   :  { %v1219_v55 = vrot.slane %v1218_v53, 4  ;;  %v1174_v56 = vpop.f32.mrf.mxu0  ;;  %v1215_v57 = vpop.f32.mrf.mxu1  ;;  %v3298_v47 = vld [vmem:[#allocation2 + $0x640] ss:$16 sps:$4 sm:$0xff]  }
 0x1f9   :  { %v1225_v58 = vsel %vm1217_vm0, %v1213_v54, 0.0  ;;  %v3299_v48 = vld [vmem:[#allocation2 + $0x720] ss:$16 sps:$4 sm:$0xff]  }
 0x1fa   :  { %v1220_v59 = vadd.f32 %v1219_v55, %v1218_v53  ;;  %v1226_v60 = vrot.slane %v1225_v58, 4  ;;  %v3301_v50 = vld [vmem:[#allocation2 + $0x700] ss:$16 sps:$4 sm:$0xff]   ;;  %v1682_v53 = vunpack.c.l.s4 %v3593_v52  ;;  %v356_v55 = vld [vmem:[%s3715_s0 + $0x4] sm:$0x3]  ;;  %s3594_s0 = smov 112  }
 0x1fb   :  { %v3302_v51 = vld [vmem:[#allocation2 + $0x600] ss:$16 sps:$4 sm:$0xff]  }
 0x1fc   :  { %v1221_v61 = vrot.slane %v1220_v59, 2  ;;  %v1227_v62 = vadd.f32 %v1226_v60, %v1225_v58 }
 0x1fe   :  { %v1222_v63 = vadd.f32 %v1221_v61, %v1220_v59  ;;  %v1228_v0 = vrot.slane %v1227_v62, 2 }
 0x200   :  { %v1229_v1 = vadd.f32 %v1228_v0, %v1227_v62  ;;  %v1223_v2 = vrot.slane %v1222_v63, 1  ;;  %v1483_v0 = vld [vmem:[#allocation4 + $0x2] ss:$8 sm:$0x3] }
 0x202   :  { %v1230_v3 = vrot.slane %v1229_v1, 1  ;;  %v1224_v9 = vadd.f32 %v1223_v2, %v1222_v63  ;;  %v1498_v2 = vld [vmem:[#allocation4 + $0x3] ss:$8 sm:$0x3] }
 0x204   :  { %v1231_v4 = vadd.f32 %v1230_v3, %v1229_v1  ;;  %v1488_v3 = vrot.slane %v1483_v0, %v3646_v7 }
 0x206   :  { %1360 = vmatprep.mubr.f32.mxu0 %v1231_v4 }
 0x207   :  { %1361 = vmatmul.mubr.f32.vlgmr.msra.gmra.mxu0 %v1224_v9 }
 0x208   :  { %3046 = vmatpush3.bf16.msra.mxu0 %v3288_v37 }
 0x209   :  { %3047 = vmatprep.subr.bf16.mxu0 %v3289_v38 }
 0x20c   :  { %3048 = vmatpush3.bf16.msra.mxu0 %v3290_v39 }
 0x20d   :  { %3049 = vmatprep.subr.bf16.mxu0 %v3291_v40 }
 0x210   :  { %3050 = vmatpush3.bf16.msra.mxu0 %v3292_v41 }
 0x211   :  { %3051 = vmatprep.subr.bf16.mxu0 %v3293_v42  ;;  %v3304_v42 = vld [vmem:[#allocation2 + $0x800] ss:$16 sps:$4 sm:$0xff]  }
 0x214   :  { %3052 = vmatpush3.bf16.msra.mxu0 %v3294_v43 }
 0x215   :  { %3053 = vmatprep.subr.bf16.mxu0 %v3295_v44 }
 0x218   :  { %3054 = vmatpush3.bf16.msra.mxu0 %v3296_v45 }
 0x219   :  { %3055 = vmatprep.subr.bf16.mxu0 %v3297_v46 }
 0x21c   :  { %3056 = vmatpush3.bf16.msra.mxu0 %v3298_v47 }
 0x21d   :  { %3057 = vmatprep.subr.bf16.mxu0 %v3299_v48  ;;  %v1654_v48 = vand.u32 127, %v372_v5 }
 0x21f   :  { %vm1655_vm4 = vcmp.lt.s32.totalorder %v1654_v48, 16 }
 0x2c7   :  { %v1362_v12 = vpop.f32.mrf.mxu0 }
 0x2c8   :  { %v1367_v13 = vmul.f32 0.03125, %v1362_v12 }
 0x2c9   :  { %v1364_v14 = vpop.f32.mrf.mxu0 }
 0x2ca   :  { %v1372_v15 = vrot.slane %v1367_v13, %v3646_v7  ;;  %v1368_v16 = vmul.f32 0.03125, %v1364_v14  ;;  %v1492_v13 = vrot.slane %v1483_v0, %v3650_v10  ;;  %v1503_v14 = vrot.slane %v1498_v2, %v3646_v7 }
 0x2cc   :  { %v3664_v17 = vsub.f32 %v1211_v49, %v1372_v15  ;;  %v1376_v18 = vrot.slane %v1368_v16, %v3646_v7  ;;  %v3300_v49 = vld [vmem:[#allocation2 + $0x620] ss:$16 sps:$4 sm:$0xff]  }
 0x2cd   :  { %3058 = vmatpush3.bf16.msra.mxu0 %v3300_v49 }
 0x2ce   :  { %v1379_v19 = vmul.f32 %v3664_v17, %v3664_v17  ;;  %v3669_v20 = vsub.f32 %v1213_v54, %v1376_v18  ;;  %3059 = vmatprep.subr.bf16.mxu0 %v3301_v50  ;;  %v1683_v54 = vunpack.c.0.s8 %v1682_v53  ;;  %v1507_v18 = vrot.slane %v1498_v2, %v3650_v10  ;;  %v3307_v2 = vld [vmem:[#allocation2 + $0x844] ss:$16 sps:$4 sm:$0xff]  }
 0x2d0   :  { %v1381_v21 = vsel %vm1217_vm0, %v1379_v19, 0.0  ;;  %v1380_v22 = vmul.f32 %v3669_v20, %v3669_v20  ;;  %v1686_v56 = vsub.s32 %v1683_v54, %v3643_v6 }
 0x2d1   :  { %v1382_v23 = vrot.slane %v1381_v21, 4  ;;  %3060 = vmatpush3.bf16.msra.mxu0 %v3302_v51 }
 0x2d2   :  { %v1388_v24 = vsel %vm1217_vm0, %v1380_v22, 0.0  ;;  %v1687_v57 = vrot.slane %v356_v55, %v1686_v56 }
 0x2d3   :  { %v1383_v25 = vadd.f32 %v1382_v23, %v1381_v21  ;;  %v1389_v26 = vrot.slane %v1388_v24, 4 }
 0x2d4   :  { %1688 = vrot.lane.b32.xlu0 %v1687_v57, %s3591_s29 }
 0x2d5   :  { %v1390_v27 = vadd.f32 %v1389_v26, %v1388_v24  ;;  %v1384_v28 = vrot.slane %v1383_v25, 2 }
 0x2d7   :  { %v1391_v29 = vrot.slane %v1390_v27, 2  ;;  %v1385_v30 = vadd.f32 %v1384_v28, %v1383_v25  ;;  %v1698_v28 = vpack.c.bf16 %v356_v55, %v356_v55 }
 0x2d9   :  { %v1392_v31 = vadd.f32 %v1391_v29, %v1390_v27  ;;  %v1386_v32 = vrot.slane %v1385_v30, 1  ;;  %1700 = vrot.lane.b32.xlu0 %v1698_v28, %s3594_s0  ;;  %v3303_v29 = vld [vmem:[#allocation2 + $0x820] ss:$16 sps:$4 sm:$0xff]   ;;  %v3355_v28 = vld [vmem:[#allocation2 + $0x86c] ss:$16 sps:$4 sm:$0xff]  }
 0x2db   :  { %v1393_v33 = vrot.slane %v1392_v31, 1  ;;  %v1387_v35 = vadd.f32 %v1386_v32, %v1385_v30  ;;  %v1516_v30 = vld [vmem:[#allocation4 + $0x4] ss:$0 sm:$0xff] }
 0x2dd   :  { %v1394_v34 = vadd.f32 %v1393_v33, %v1392_v31 }
 0x2df   :  { %1459 = vmatprep.mubr.f32.mxu1 %v1394_v34 }
 0x2e0   :  { %1460 = vmatmul.mubr.f32.vlgmr.msra.gmra.mxu1 %v1387_v35 }
 0x346   :  { %v1689_v41 = vpop.permute.xlu0 %1688 }
 0x34b   :  { %v1701_v43 = vpop.permute.xlu0 %1700 }
 0x3a0   :  { %v1461_v58 = vpop.f32.mrf.mxu1 }
 0x3a1   :  { %v1466_v59 = vmul.f32 0.03125, %v1461_v58 }
 0x3a2   :  { %v1463_v60 = vpop.f32.mrf.mxu1 }
 0x3a3   :  { %v1468_v61 = vadd.f32 1e-05, %v1466_v59  ;;  %v1467_v62 = vmul.f32 0.03125, %v1463_v60 }
 0x3a5   :  { %3500 = vrsqrt.f32 %v1468_v61  ;;  %v1469_v63 = vadd.f32 1e-05, %v1467_v62 }
 0x3a7   :  { %3502 = vrsqrt.f32 %v1469_v63 }
 0x3b2   :  { %v3501_v1 = vpop.eup %3500 }
 0x3b3   :  { %v1475_v4 = vrot.slane %v3501_v1, %v3646_v7 }
 0x3b4   :  { %v3503_v9 = vpop.eup %3502 }
 0x3b5   :  { %v1479_v12 = vrot.slane %v3503_v9, %v3646_v7  ;;  %v1480_v15 = vmul.f32 %v1475_v4, %v3664_v17  ;;  %v3595_v17 = vmov 0.0   ;;  %v3597_v4 = vmov 0   ;;  %v3310_v9 = vld [vmem:[#allocation2 + $0x944] ss:$16 sps:$4 sm:$0xff]  }
 0x3b6   :  { %3071 = vmatprep.subr.bf16.mxu1 %v3595_v17  ;;  %3073 = vmatprep.mubr.msk.bf16.mxu1 %vm3596_vm1, %v3595_v17 }
 0x3b7   :  { %v1481_v16 = vmul.f32 %v1479_v12, %v3669_v20  ;;  %v1495_v19 = vmul.f32 %v1488_v3, %v1480_v15  ;;  %3072 = vmatpush3.bf16.msra.mxu1 %v3303_v29  ;;  %v3305_v3 = vld [vmem:[#allocation2 + $0x840] ss:$16 sps:$4 sm:$0xff]   ;;  %v3311_v12 = vld [vmem:[#allocation2 + $0x948] ss:$16 sps:$4 sm:$0xff]  }
 0x3b8   :  { %3077 = vmatprep.subr.bf16.mxu1 %v3595_v17  ;;  %v3317_v15 = vld [vmem:[#allocation2 + $0x928] ss:$16 sps:$4 sm:$0xff]  }
 0x3b9   :  { %v1496_v21 = vmul.f32 %v1492_v13, %v1481_v16  ;;  %v1510_v22 = vadd.f32 %v1503_v14, %v1495_v19  ;;  %v3313_v13 = vld [vmem:[#allocation2 + $0x94c] ss:$16 sps:$4 sm:$0xff]   ;;  %v3353_v29 = vld [vmem:[#allocation2 + $0x868] ss:$16 sps:$4 sm:$0xff]  }
 0x3ba   :  { %3074 = vmatmul.mubr.msk.bf16.vlgmr.msra.gmra.mxu1 %vm1708_vm2, %v1701_v43  ;;  %v3319_v14 = vld [vmem:[#allocation2 + $0x92c] ss:$16 sps:$4 sm:$0xff]   ;;  %2263 = vmatprep.subr.bf16.mxu0 %v3313_v13  ;;  %v3368_v13 = vld [vmem:[#allocation2 + $0xa00] ss:$16 sps:$4 sm:$0xff]  }
 0x3bb   :  { %v1511_v23 = vadd.f32 %v1507_v18, %v1496_v21  ;;  %v1512_v24 = vmax.f32 %v1510_v22, 0.0  ;;  %3078 = vmatpush3.bf16.msra.mxu1 %v3304_v42  ;;  %3079 = vmatprep.mubr.msk.bf16.mxu1 %vm3596_vm1, %v3595_v17  ;;  %v3325_v16 = vld [vmem:[#allocation2 + $0x90c] ss:$16 sps:$4 sm:$0xff]   ;;  %v3323_v18 = vld [vmem:[#allocation2 + $0x908] ss:$16 sps:$4 sm:$0xff]  }
 0x3bc   :  { %1850 = vmatprep.subr.bf16.mxu1 %v3307_v2  ;;  %v3331_v19 = vld [vmem:[#allocation2 + $0x8ec] ss:$16 sps:$4 sm:$0xff]   ;;  %v3329_v21 = vld [vmem:[#allocation2 + $0x8e8] ss:$16 sps:$4 sm:$0xff]   ;;  %v3358_v2 = vld [vmem:[#allocation2 + $0xa44] ss:$16 sps:$4 sm:$0xff]  }
 0x3bd   :  { %v1513_v25 = vmax.f32 %v1511_v23, 0.0  ;;  %v1514_v27 = vpack.c.bf16 %v1512_v24, %v1512_v24  ;;  %v3337_v22 = vld [vmem:[#allocation2 + $0x8cc] ss:$16 sps:$4 sm:$0xff]   ;;  %v3335_v23 = vld [vmem:[#allocation2 + $0x8c8] ss:$16 sps:$4 sm:$0xff]  }
 0x3be   :  { %v3343_v24 = vld [vmem:[#allocation2 + $0x8ac] ss:$16 sps:$4 sm:$0xff]  }
 0x3bf   :  { %v1515_v26 = vpack.c.bf16 %v1513_v25, %v1513_v25  ;;  %v3341_v25 = vld [vmem:[#allocation2 + $0x8a8] ss:$16 sps:$4 sm:$0xff]   ;;  %v3361_v17 = vld [vmem:[#allocation2 + $0xa4c] ss:$16 sps:$4 sm:$0xff]  }
 0x3c1   :  { %1645 = vmatprep.mubr.bf16.mxu0 %v1515_v26  ;;  %v3349_v26 = vld [vmem:[#allocation2 + $0x88c] ss:$16 sps:$4 sm:$0xff]  }
 0x3c2   :  { %1646 = vmatmul.mubr.bf16.vlgmr.msra.gmra.mxu0 %v1514_v27  ;;  %v3347_v27 = vld [vmem:[#allocation2 + $0x888] ss:$16 sps:$4 sm:$0xff]  }
 0x3c3   :  { %2264 = vmatpush1.bf16.msra.mxu0 %v3311_v12  ;;  %v3370_v12 = vld [vmem:[#allocation2 + $0xa04] ss:$16 sps:$4 sm:$0xff]  }
 0x3c4   :  { %2265 = vmatprep.subr.bf16.mxu0 %v3319_v14  ;;  %v3376_v14 = vld [vmem:[#allocation2 + $0x9e4] ss:$16 sps:$4 sm:$0xff]  }
 0x3c7   :  { %2266 = vmatpush1.bf16.msra.mxu0 %v3317_v15  ;;  %v3374_v15 = vld [vmem:[#allocation2 + $0x9e0] ss:$16 sps:$4 sm:$0xff]  }
 0x3c8   :  { %2267 = vmatprep.subr.bf16.mxu0 %v3325_v16  ;;  %v3382_v16 = vld [vmem:[#allocation2 + $0x9c4] ss:$16 sps:$4 sm:$0xff]  }
 0x3cb   :  { %2268 = vmatpush1.bf16.msra.mxu0 %v3323_v18  ;;  %v3380_v18 = vld [vmem:[#allocation2 + $0x9c0] ss:$16 sps:$4 sm:$0xff]  }
 0x3cc   :  { %2269 = vmatprep.subr.bf16.mxu0 %v3331_v19  ;;  %v3388_v19 = vld [vmem:[#allocation2 + $0x9a4] ss:$16 sps:$4 sm:$0xff]  }
 0x3cf   :  { %2270 = vmatpush1.bf16.msra.mxu0 %v3329_v21  ;;  %v3386_v21 = vld [vmem:[#allocation2 + $0x9a0] ss:$16 sps:$4 sm:$0xff]  }
 0x3d0   :  { %2271 = vmatprep.subr.bf16.mxu0 %v3337_v22  ;;  %v3394_v22 = vld [vmem:[#allocation2 + $0x984] ss:$16 sps:$4 sm:$0xff]  }
 0x3d3   :  { %2272 = vmatpush1.bf16.msra.mxu0 %v3335_v23  ;;  %v3397_v23 = vld [vmem:[#allocation2 + $0x98c] ss:$16 sps:$4 sm:$0xff]  }
 0x3d4   :  { %2273 = vmatprep.subr.bf16.mxu0 %v3343_v24  ;;  %v3392_v24 = vld [vmem:[#allocation2 + $0x980] ss:$16 sps:$4 sm:$0xff]  }
 0x3d7   :  { %2274 = vmatpush1.bf16.msra.mxu0 %v3341_v25  ;;  %v3395_v25 = vld [vmem:[#allocation2 + $0x988] ss:$16 sps:$4 sm:$0xff]  }
 0x3d8   :  { %2275 = vmatprep.subr.bf16.mxu0 %v3349_v26  ;;  %v3400_v26 = vld [vmem:[#allocation2 + $0x964] ss:$16 sps:$4 sm:$0xff]  }
 0x3db   :  { %2276 = vmatpush1.bf16.msra.mxu0 %v3347_v27  ;;  %v3403_v27 = vld [vmem:[#allocation2 + $0x96c] ss:$16 sps:$4 sm:$0xff]  }
 0x3dc   :  { %2277 = vmatprep.subr.bf16.mxu0 %v3355_v28  ;;  %v3398_v28 = vld [vmem:[#allocation2 + $0x960] ss:$16 sps:$4 sm:$0xff]  }
 0x3df   :  { %2278 = vmatpush1.bf16.msra.mxu0 %v3353_v29  ;;  %v3401_v29 = vld [vmem:[#allocation2 + $0x968] ss:$16 sps:$4 sm:$0xff]  }
 0x3e0   :  { %2279 = vmatprep.subr.bf16.mxu0 %v3361_v17  ;;  %v3406_v17 = vld [vmem:[#allocation2 + $0xb44] ss:$16 sps:$4 sm:$0xff]  }
 0x47a   :  { %v3698_v62 = vpop.f32.mrf.mxu1 }
 0x47c   :  { %v3075_v63 = vpop.f32.mrf.mxu1 }
 0x47d   :  { %v3344_v63 = vld [vmem:[#allocation2 + $0x880] ss:$16 sps:$4 sm:$0xff]  }
 0x47e   :  { %v1749_v0 = vpop.f32.mrf.mxu1 }
 0x47f   :  { %v3352_v0 = vld [vmem:[#allocation2 + $0x864] ss:$16 sps:$4 sm:$0xff]  }
 0x480   :  { %v3076_v1 = vpop.f32.mrf.mxu1 }
 0x481   :  { %v3350_v1 = vld [vmem:[#allocation2 + $0x860] ss:$16 sps:$4 sm:$0xff]  }
 0x482   :  { %v3061_v20 = vpop.f32.mrf.mxu0 }
 0x484   :  { %v3062_v31 = vpop.f32.mrf.mxu0 }
 0x485   :  { %v3063_v32 = vadd.f32 %v3062_v31, %v3061_v20  ;;  %v3359_v20 = vld [vmem:[#allocation2 + $0xa48] ss:$16 sps:$4 sm:$0xff]  }
 0x486   :  { %v3064_v33 = vpop.f32.mrf.mxu0  ;;  %2280 = vmatpush2.bf16.msra.mxu0 %v3359_v20  ;;  %v3365_v31 = vld [vmem:[#allocation2 + $0xa28] ss:$16 sps:$4 sm:$0xff]   ;;  %v3409_v20 = vld [vmem:[#allocation2 + $0xd44] ss:$16 sps:$4 sm:$0xff]  }
 0x487   :  { %v1648_v34 = vadd.f32 %v3063_v32, %v1516_v30  ;;  %v3367_v30 = vld [vmem:[#allocation2 + $0xa2c] ss:$16 sps:$4 sm:$0xff]   ;;  %v3371_v33 = vld [vmem:[#allocation2 + $0xa08] ss:$16 sps:$4 sm:$0xff]  }
 0x488   :  { %v3065_v35 = vpop.f32.mrf.mxu0  ;;  %2281 = vmatprep.subr.bf16.mxu0 %v3367_v30  ;;  %v3373_v32 = vld [vmem:[#allocation2 + $0xa0c] ss:$16 sps:$4 sm:$0xff]  }
 0x489   :  { %v1659_v36 = vand.u32 2147483647, %v1648_v34  ;;  %v1656_v51 = vmax.f32 %v1648_v34, 0.0  ;;  %vm1657_vm5 = vcmp.ne.f32.partialorder %v1648_v34, %v1648_v34  ;;  %v3377_v35 = vld [vmem:[#allocation2 + $0x9e8] ss:$16 sps:$4 sm:$0xff]  }
 0x48a   :  { %2282 = vmatpush2.bf16.msra.mxu0 %v3365_v31  ;;  %v1811_v30 = vld [vmem:[#allocation4 + $0x6] ss:$8 sm:$0x3] }
 0x48b   :  { %v1660_v37 = vsub.f32 0.0, %v1659_v36  ;;  %2283 = vmatprep.subr.bf16.mxu0 %v3373_v32  ;;  %v3385_v36 = vld [vmem:[#allocation2 + $0x9cc] ss:$16 sps:$4 sm:$0xff]   ;;  %v1816_v31 = vrot.slane %v1811_v30, %v3646_v7  ;;  %v1820_v32 = vrot.slane %v1811_v30, %v3650_v10  ;;  %v3476_v30 = vld [vmem:[#allocation2 + $0xbc0] ss:$16 sps:$4 sm:$0xff]  }
 0x48d   :  { %v1661_v38 = vmul.f32 1.442695, %v1660_v37  ;;  %v3383_v37 = vld [vmem:[#allocation2 + $0x9c8] ss:$16 sps:$4 sm:$0xff]  }
 0x48e   :  { %2284 = vmatpush2.bf16.msra.mxu0 %v3371_v33 }
 0x48f   :  { %3504 = vpow2.f32 %v1661_v38  ;;  %v3391_v38 = vld [vmem:[#allocation2 + $0x9ac] ss:$16 sps:$4 sm:$0xff]  }
 0x49c   :  { %v3505_v39 = vpop.eup %3504 }
 0x49d   :  { %v1663_v40 = vadd.f32 1.0, %v3505_v39  ;;  %v1666_v44 = vmul.f32 -0.5, %v3505_v39  ;;  %v1669_v46 = vand.u32 2147483647, %v3505_v39 }
 0x49f   :  { %3506 = vlog2.f32 %v1663_v40  ;;  %v1667_v45 = vadd.f32 1.0, %v1666_v44  ;;  %vm1670_vm3 = vcmp.lt.f32.partialorder %v1669_v46, 0.0004427343 }
 0x4a1   :  { %v1668_v50 = vmul.f32 %v3505_v39, %v1667_v45  ;;  %v3389_v39 = vld [vmem:[#allocation2 + $0x9a8] ss:$16 sps:$4 sm:$0xff]  }
 0x4ac   :  { %v3507_v47 = vpop.eup %3506 }
 0x4ad   :  { %v1665_v49 = vmul.f32 0.6931472, %v3507_v47 }
 0x4af   :  { %v1671_v52 = vsel %vm1670_vm3, %v1668_v50, %v1665_v49 }
 0x4b0   :  { %v1672_v53 = vadd.f32 %v1671_v52, %v1656_v51  ;;  %v3308_v51 = vld [vmem:[#allocation2 + $0x940] ss:$16 sps:$4 sm:$0xff]  }
 0x4b2   :  { %v1673_v54 = vsel %vm1657_vm5, %v1648_v34, %v1672_v53  ;;  %v3316_v53 = vld [vmem:[#allocation2 + $0x924] ss:$16 sps:$4 sm:$0xff]  }
 0x4b3   :  { %v1674_v55 = vsel %vm1655_vm4, %v1648_v34, %v1673_v54  ;;  %v3314_v54 = vld [vmem:[#allocation2 + $0x920] ss:$16 sps:$4 sm:$0xff]  }
 0x4b4   :  { %1676 = vst.msk [vmem:[%s3719_s4] sm:$0x3] %vm1675_vm6, %v1674_v55  ;;  %v1677_v56 = vmul.f32 0.5, %v1674_v55  ;;  %v3322_v55 = vld [vmem:[#allocation2 + $0x904] ss:$16 sps:$4 sm:$0xff]  }
 0x4b6   :  { %v1678_v57 = vmul.f32 1.442695, %v1677_v56  ;;  %v3320_v56 = vld [vmem:[#allocation2 + $0x900] ss:$16 sps:$4 sm:$0xff]  }
 0x4b8   :  { %3508 = vpow2.f32 %v1678_v57  ;;  %v3328_v57 = vld [vmem:[#allocation2 + $0x8e4] ss:$16 sps:$4 sm:$0xff]  }
 0x4c5   :  { %v3509_v58 = vpop.eup %3508 }
 0x4c6   :  { %v1691_v5 = vmul.f32 %v3509_v58, %v1689_v41  ;;  %v1801_v41 = vld [vmem:[#allocation4 + $0x5] ss:$0 sm:$0xff]  ;;  %v3326_v58 = vld [vmem:[#allocation2 + $0x8e0] ss:$16 sps:$4 sm:$0xff]  }
 0x4c8   :  { %1693 = vrot.lane.b32.xlu1 %v1691_v5, %s3594_s0  ;;  %v3334_v5 = vld [vmem:[#allocation2 + $0x8c4] ss:$16 sps:$4 sm:$0xff]  }
 0x53a   :  { %v1694_v59 = vpop.permute.xlu1 %1693 }
 0x53b   :  { %v1696_v60 = vadd.f32 %v1694_v59, %v1648_v34  ;;  %v3379_v34 = vld [vmem:[#allocation2 + $0x9ec] ss:$16 sps:$4 sm:$0xff]   ;;  %v3332_v59 = vld [vmem:[#allocation2 + $0x8c0] ss:$16 sps:$4 sm:$0xff]  }
 0x53c   :  { %2285 = vmatprep.subr.bf16.mxu0 %v3379_v34 }
 0x53d   :  { %v1697_v61 = vpack.c.bf16 %v1696_v60, %v1696_v60  ;;  %2286 = vmatpush2.bf16.msra.mxu0 %v3377_v35  ;;  %v3340_v60 = vld [vmem:[#allocation2 + $0x8a4] ss:$16 sps:$4 sm:$0xff]  }
 0x53e   :  { %2287 = vmatprep.subr.bf16.mxu0 %v3385_v36 }
 0x53f   :  { %3080 = vmatmul.mubr.msk.bf16.vlgmr.msra.gmra.mxu1 %vm1708_vm2, %v1697_v61  ;;  %v3338_v61 = vld [vmem:[#allocation2 + $0x8a0] ss:$16 sps:$4 sm:$0xff]  }
 0x540   :  { %1851 = vmatpush1.bf16.msra.mxu1 %v3305_v3  ;;  %1868 = vmatprep.mubr.bf16.mxu1 %v3597_v4  ;;  %v3356_v3 = vld [vmem:[#allocation2 + $0xa40] ss:$16 sps:$4 sm:$0xff]   ;;  %v3364_v4 = vld [vmem:[#allocation2 + $0xa24] ss:$16 sps:$4 sm:$0xff]  }
 0x541   :  { %2222 = vmatprep.subr.bf16.mxu1 %v3310_v9  ;;  %2288 = vmatpush2.bf16.msra.mxu0 %v3383_v37  ;;  %v3362_v9 = vld [vmem:[#allocation2 + $0xa20] ss:$16 sps:$4 sm:$0xff]  }
 0x542   :  { %2289 = vmatprep.subr.bf16.mxu0 %v3391_v38 }
 0x545   :  { %2290 = vmatpush2.bf16.msra.mxu0 %v3389_v39  ;;  %v3404_v39 = vld [vmem:[#allocation2 + $0xb40] ss:$16 sps:$4 sm:$0xff]  }
 0x546   :  { %2291 = vmatprep.subr.bf16.mxu0 %v3397_v23  ;;  %v3469_v23 = vld [vmem:[#allocation2 + $0xe04] ss:$16 sps:$4 sm:$0xff]  }
 0x549   :  { %2292 = vmatpush2.bf16.msra.mxu0 %v3395_v25  ;;  %v3467_v25 = vld [vmem:[#allocation2 + $0xe00] ss:$16 sps:$4 sm:$0xff]  }
 0x54a   :  { %2293 = vmatprep.subr.bf16.mxu0 %v3403_v27  ;;  %v3475_v27 = vld [vmem:[#allocation2 + $0xde4] ss:$16 sps:$4 sm:$0xff]  }
 0x54d   :  { %2294 = vmatpush2.bf16.msra.mxu0 %v3401_v29  ;;  %v3473_v29 = vld [vmem:[#allocation2 + $0xde0] ss:$16 sps:$4 sm:$0xff]  }
 0x54e   :  { %2686 = vmatprep.subr.bf16.mxu0 %v3409_v20  ;;  %v3481_v20 = vld [vmem:[#allocation2 + $0xdc4] ss:$16 sps:$4 sm:$0xff]  }
 0x5ff   :  { %v1795_v40 = vpop.f32.mrf.mxu1 }
 0x600   :  { %v1796_v42 = vadd.f32 %v1795_v40, %v3698_v62  ;;  %v3346_v62 = vld [vmem:[#allocation2 + $0x884] ss:$16 sps:$4 sm:$0xff]   ;;  %v3407_v40 = vld [vmem:[#allocation2 + $0xd40] ss:$16 sps:$4 sm:$0xff]  }
 0x601   :  { %v3081_v43 = vpop.f32.mrf.mxu1 }
 0x602   :  { %v1802_v44 = vadd.f32 %v1801_v41, %v1796_v42  ;;  %v3412_v43 = vld [vmem:[#allocation2 + $0xb24] ss:$16 sps:$4 sm:$0xff]  }
 0x603   :  { %v1798_v45 = vpop.f32.mrf.mxu1 }
 0x604   :  { %v2910_v46 = vmul.f32 -1.442695, %v1802_v44  ;;  %v3415_v44 = vld [vmem:[#allocation2 + $0xd24] ss:$16 sps:$4 sm:$0xff]   ;;  %v3410_v45 = vld [vmem:[#allocation2 + $0xb20] ss:$16 sps:$4 sm:$0xff]  }
 0x605   :  { %v3082_v47 = vpop.f32.mrf.mxu1 }
 0x606   :  { %3510 = vpow2.f32 %v2910_v46  ;;  %v3413_v46 = vld [vmem:[#allocation2 + $0xd20] ss:$16 sps:$4 sm:$0xff]   ;;  %v3418_v47 = vld [vmem:[#allocation2 + $0xb04] ss:$16 sps:$4 sm:$0xff]  }
 0x613   :  { %v3511_v48 = vpop.eup %3510 }
 0x614   :  { %v1806_v49 = vadd.f32 1.0, %v3511_v48  ;;  %v3421_v48 = vld [vmem:[#allocation2 + $0xd04] ss:$16 sps:$4 sm:$0xff]  }
 0x616   :  { %3512 = vrcp.f32 %v1806_v49  ;;  %v3416_v49 = vld [vmem:[#allocation2 + $0xb00] ss:$16 sps:$4 sm:$0xff]  }
 0x623   :  { %v3513_v50 = vpop.eup %3512 }
 0x624   :  { %v1809_v52 = vpack.c.bf16 %v3513_v50, %v3513_v50  ;;  %v3419_v50 = vld [vmem:[#allocation2 + $0xd00] ss:$16 sps:$4 sm:$0xff]  }
 0x626   :  { %2913 = vmatmul.mubr.msk.bf16.vlgmr.msra.gmra.mxu1 %vm1708_vm2, %v1809_v52  ;;  %v3427_v52 = vld [vmem:[#allocation2 + $0xce4] ss:$16 sps:$4 sm:$0xff]  }
 0x627   :  { %2223 = vmatpush1.bf16.msra.mxu1 %v3308_v51  ;;  %v3424_v51 = vld [vmem:[#allocation2 + $0xae4] ss:$16 sps:$4 sm:$0xff]  }
 0x628   :  { %2224 = vmatprep.subr.bf16.mxu1 %v3316_v53  ;;  %v3422_v53 = vld [vmem:[#allocation2 + $0xae0] ss:$16 sps:$4 sm:$0xff]  }
 0x62b   :  { %2225 = vmatpush1.bf16.msra.mxu1 %v3314_v54  ;;  %v3425_v54 = vld [vmem:[#allocation2 + $0xce0] ss:$16 sps:$4 sm:$0xff]  }
 0x62c   :  { %2226 = vmatprep.subr.bf16.mxu1 %v3322_v55  ;;  %v3430_v55 = vld [vmem:[#allocation2 + $0xac4] ss:$16 sps:$4 sm:$0xff]  }
 0x62f   :  { %2227 = vmatpush1.bf16.msra.mxu1 %v3320_v56  ;;  %v3433_v56 = vld [vmem:[#allocation2 + $0xcc4] ss:$16 sps:$4 sm:$0xff]  }
 0x630   :  { %2228 = vmatprep.subr.bf16.mxu1 %v3328_v57  ;;  %v3428_v57 = vld [vmem:[#allocation2 + $0xac0] ss:$16 sps:$4 sm:$0xff]  }
 0x633   :  { %2229 = vmatpush1.bf16.msra.mxu1 %v3326_v58  ;;  %v3431_v58 = vld [vmem:[#allocation2 + $0xcc0] ss:$16 sps:$4 sm:$0xff]  }
 0x634   :  { %2230 = vmatprep.subr.bf16.mxu1 %v3334_v5  ;;  %v3436_v5 = vld [vmem:[#allocation2 + $0xaa4] ss:$16 sps:$4 sm:$0xff]  }
 0x637   :  { %2231 = vmatpush1.bf16.msra.mxu1 %v3332_v59  ;;  %v3439_v59 = vld [vmem:[#allocation2 + $0xca4] ss:$16 sps:$4 sm:$0xff]  }
 0x638   :  { %2232 = vmatprep.subr.bf16.mxu1 %v3340_v60  ;;  %v3434_v60 = vld [vmem:[#allocation2 + $0xaa0] ss:$16 sps:$4 sm:$0xff]  }
 0x63b   :  { %2233 = vmatpush1.bf16.msra.mxu1 %v3338_v61  ;;  %v3437_v61 = vld [vmem:[#allocation2 + $0xca0] ss:$16 sps:$4 sm:$0xff]  }
 0x63c   :  { %2234 = vmatprep.subr.bf16.mxu1 %v3346_v62  ;;  %v3442_v62 = vld [vmem:[#allocation2 + $0xa84] ss:$16 sps:$4 sm:$0xff]  }
 0x63f   :  { %2235 = vmatpush1.bf16.msra.mxu1 %v3344_v63  ;;  %v3445_v63 = vld [vmem:[#allocation2 + $0xc84] ss:$16 sps:$4 sm:$0xff]  }
 0x640   :  { %2236 = vmatprep.subr.bf16.mxu1 %v3352_v0  ;;  %v3440_v0 = vld [vmem:[#allocation2 + $0xa80] ss:$16 sps:$4 sm:$0xff]  }
 0x643   :  { %2237 = vmatpush1.bf16.msra.mxu1 %v3350_v1  ;;  %v3443_v1 = vld [vmem:[#allocation2 + $0xc80] ss:$16 sps:$4 sm:$0xff]  }
 0x644   :  { %2238 = vmatprep.subr.bf16.mxu1 %v3358_v2  ;;  %v3448_v2 = vld [vmem:[#allocation2 + $0xa64] ss:$16 sps:$4 sm:$0xff]  }
 0x647   :  { %2239 = vmatpush2.bf16.msra.mxu1 %v3356_v3  ;;  %v3451_v3 = vld [vmem:[#allocation2 + $0xc64] ss:$16 sps:$4 sm:$0xff]  }
 0x648   :  { %2240 = vmatprep.subr.bf16.mxu1 %v3364_v4  ;;  %v3446_v4 = vld [vmem:[#allocation2 + $0xa60] ss:$16 sps:$4 sm:$0xff]  }
 0x64b   :  { %2241 = vmatpush2.bf16.msra.mxu1 %v3362_v9  ;;  %v3449_v9 = vld [vmem:[#allocation2 + $0xc60] ss:$16 sps:$4 sm:$0xff]  }
 0x64c   :  { %2242 = vmatprep.subr.bf16.mxu1 %v3370_v12  ;;  %v3454_v12 = vld [vmem:[#allocation2 + $0xc44] ss:$16 sps:$4 sm:$0xff]  }
 0x64f   :  { %2243 = vmatpush2.bf16.msra.mxu1 %v3368_v13  ;;  %v3457_v13 = vld [vmem:[#allocation2 + $0xe44] ss:$16 sps:$4 sm:$0xff]  }
 0x650   :  { %2244 = vmatprep.subr.bf16.mxu1 %v3376_v14  ;;  %v3452_v14 = vld [vmem:[#allocation2 + $0xc40] ss:$16 sps:$4 sm:$0xff]  }
 0x653   :  { %2245 = vmatpush2.bf16.msra.mxu1 %v3374_v15  ;;  %v3455_v15 = vld [vmem:[#allocation2 + $0xe40] ss:$16 sps:$4 sm:$0xff]  }
 0x654   :  { %2246 = vmatprep.subr.bf16.mxu1 %v3382_v16  ;;  %v3460_v16 = vld [vmem:[#allocation2 + $0xc24] ss:$16 sps:$4 sm:$0xff]  }
 0x657   :  { %2247 = vmatpush2.bf16.msra.mxu1 %v3380_v18  ;;  %v3463_v18 = vld [vmem:[#allocation2 + $0xe24] ss:$16 sps:$4 sm:$0xff]  }
 0x658   :  { %2248 = vmatprep.subr.bf16.mxu1 %v3388_v19  ;;  %v3458_v19 = vld [vmem:[#allocation2 + $0xc20] ss:$16 sps:$4 sm:$0xff]  }
 0x65b   :  { %2249 = vmatpush2.bf16.msra.mxu1 %v3386_v21  ;;  %v3461_v21 = vld [vmem:[#allocation2 + $0xe20] ss:$16 sps:$4 sm:$0xff]  }
 0x65c   :  { %2250 = vmatprep.subr.bf16.mxu1 %v3394_v22  ;;  %v3466_v22 = vld [vmem:[#allocation2 + $0xc04] ss:$16 sps:$4 sm:$0xff]  }
 0x65f   :  { %2251 = vmatpush2.bf16.msra.mxu1 %v3392_v24  ;;  %v3464_v24 = vld [vmem:[#allocation2 + $0xc00] ss:$16 sps:$4 sm:$0xff]  }
 0x660   :  { %2252 = vmatprep.subr.bf16.mxu1 %v3400_v26  ;;  %v3472_v26 = vld [vmem:[#allocation2 + $0xbe4] ss:$16 sps:$4 sm:$0xff]  }
 0x663   :  { %2253 = vmatpush2.bf16.msra.mxu1 %v3398_v28  ;;  %v3470_v28 = vld [vmem:[#allocation2 + $0xbe0] ss:$16 sps:$4 sm:$0xff]  }
 0x664   :  { %2645 = vmatprep.subr.bf16.mxu1 %v3406_v17  ;;  %v3478_v17 = vld [vmem:[#allocation2 + $0xbc4] ss:$16 sps:$4 sm:$0xff]  }
 0x6e6   :  { %v1870_v33 = vpop.f32.mrf.mxu1 }
 0x6e7   :  { %v1871_v34 = vadd.f32 %v1870_v33, %v1816_v31  ;;  %v3479_v31 = vld [vmem:[#allocation2 + $0xdc0] ss:$16 sps:$4 sm:$0xff]   ;;  %v3487_v33 = vld [vmem:[#allocation2 + $0xda4] ss:$16 sps:$4 sm:$0xff]  }
 0x6e8   :  { %v1872_v35 = vpop.f32.mrf.mxu1 }
 0x6e9   :  { %v1873_v36 = vadd.f32 %v1872_v35, %v1820_v32  ;;  %v1877_v41 = vpack.c.bf16 %v1871_v34, %v1871_v34  ;;  %v3484_v32 = vld [vmem:[#allocation2 + $0xba4] ss:$16 sps:$4 sm:$0xff]   ;;  %v3482_v34 = vld [vmem:[#allocation2 + $0xba0] ss:$16 sps:$4 sm:$0xff]  }
 0x6ea   :  { %v1874_v37 = vpop.f32.mrf.mxu1  ;;  %v3485_v35 = vld [vmem:[#allocation2 + $0xda0] ss:$16 sps:$4 sm:$0xff]  }
 0x6eb   :  { %v1878_v38 = vpack.c.bf16 %v1873_v36, %v1873_v36  ;;  %v3490_v36 = vld [vmem:[#allocation2 + $0xb84] ss:$16 sps:$4 sm:$0xff]  }
 0x6ec   :  { %v1875_v42 = vpop.f32.mrf.mxu1  ;;  %v3493_v37 = vld [vmem:[#allocation2 + $0xd84] ss:$16 sps:$4 sm:$0xff]  }
 0x6ed   :  { %2254 = vmatprep.mubr.bf16.mxu1 %v1878_v38  ;;  %2295 = vmatprep.mubr.bf16.mxu0 %v1878_v38  ;;  %v3488_v38 = vld [vmem:[#allocation2 + $0xb80] ss:$16 sps:$4 sm:$0xff]  }
 0x6ee   :  { %2255 = vmatmul.mubr.bf16.vlgmr.msra.gmra.mxu1 %v1877_v41  ;;  %2296 = vmatmul.mubr.bf16.vlgmr.msra.gmra.mxu0 %v1877_v41  ;;  %v3499_v41 = vld [vmem:[#allocation2 + $0xd64] ss:$16 sps:$4 sm:$0xff]   ;;  %v3494_v42 = vld [vmem:[#allocation2 + $0xb60] ss:$16 sps:$4 sm:$0xff]  }
 0x6ef   :  { %2646 = vmatpush1.bf16.msra.mxu1 %v3404_v39  ;;  %2687 = vmatpush1.bf16.msra.mxu0 %v3407_v40  ;;  %v3491_v39 = vld [vmem:[#allocation2 + $0xd80] ss:$16 sps:$4 sm:$0xff]   ;;  %v3496_v40 = vld [vmem:[#allocation2 + $0xb64] ss:$16 sps:$4 sm:$0xff]  }
 0x6f0   :  { %2647 = vmatprep.subr.bf16.mxu1 %v3412_v43  ;;  %2688 = vmatprep.subr.bf16.mxu0 %v3415_v44  ;;  %v3497_v43 = vld [vmem:[#allocation2 + $0xd60] ss:$16 sps:$4 sm:$0xff]   ;;  %v1880_v44 = vld [vmem:[#allocation4 + $0x7] ss:$8 sm:$0xf] }
 0x6f3   :  { %2648 = vmatpush1.bf16.msra.mxu1 %v3410_v45  ;;  %2689 = vmatpush1.bf16.msra.mxu0 %v3413_v46  ;;  %v1885_v45 = vrot.slane %v1880_v44, %v3646_v7  ;;  %v1893_v46 = vrot.slane %v1880_v44, %v382_v8 }
 0x6f4   :  { %2649 = vmatprep.subr.bf16.mxu1 %v3418_v47  ;;  %2690 = vmatprep.subr.bf16.mxu0 %v3421_v48  ;;  %v1889_v47 = vrot.slane %v1880_v44, %v3650_v10  ;;  %v1897_v48 = vrot.slane %v1880_v44, %v386_v11 }
 0x6f7   :  { %2650 = vmatpush1.bf16.msra.mxu1 %v3416_v49  ;;  %2691 = vmatpush1.bf16.msra.mxu0 %v3419_v50 }
 0x6f8   :  { %2651 = vmatprep.subr.bf16.mxu1 %v3424_v51  ;;  %2692 = vmatprep.subr.bf16.mxu0 %v3427_v52 }
 0x6fb   :  { %2652 = vmatpush1.bf16.msra.mxu1 %v3422_v53  ;;  %2693 = vmatpush1.bf16.msra.mxu0 %v3425_v54 }
 0x6fc   :  { %2653 = vmatprep.subr.bf16.mxu1 %v3430_v55  ;;  %2694 = vmatprep.subr.bf16.mxu0 %v3433_v56 }
 0x6ff   :  { %2654 = vmatpush1.bf16.msra.mxu1 %v3428_v57  ;;  %2695 = vmatpush1.bf16.msra.mxu0 %v3431_v58 }
 0x700   :  { %2655 = vmatprep.subr.bf16.mxu1 %v3436_v5  ;;  %2696 = vmatprep.subr.bf16.mxu0 %v3439_v59 }
 0x703   :  { %2656 = vmatpush1.bf16.msra.mxu1 %v3434_v60  ;;  %2697 = vmatpush1.bf16.msra.mxu0 %v3437_v61 }
 0x704   :  { %2657 = vmatprep.subr.bf16.mxu1 %v3442_v62  ;;  %2698 = vmatprep.subr.bf16.mxu0 %v3445_v63 }
 0x707   :  { %2658 = vmatpush1.bf16.msra.mxu1 %v3440_v0  ;;  %2699 = vmatpush1.bf16.msra.mxu0 %v3443_v1  ;;  %v2313_v1 = vld [vmem:[#allocation4 + $0x20] ss:$8 sm:$0x3] }
 0x708   :  { %2659 = vmatprep.subr.bf16.mxu1 %v3448_v2  ;;  %2700 = vmatprep.subr.bf16.mxu0 %v3451_v3  ;;  %v2318_v2 = vrot.slane %v2313_v1, %v3646_v7  ;;  %v2322_v3 = vrot.slane %v2313_v1, %v3650_v10 }
 0x70b   :  { %2660 = vmatpush1.bf16.msra.mxu1 %v3446_v4  ;;  %2701 = vmatpush1.bf16.msra.mxu0 %v3449_v9 }
 0x70c   :  { %2661 = vmatprep.subr.bf16.mxu1 %v3454_v12  ;;  %2702 = vmatprep.subr.bf16.mxu0 %v3457_v13 }
 0x70f   :  { %2662 = vmatpush2.bf16.msra.mxu1 %v3452_v14  ;;  %2703 = vmatpush2.bf16.msra.mxu0 %v3455_v15 }
 0x710   :  { %2663 = vmatprep.subr.bf16.mxu1 %v3460_v16  ;;  %2704 = vmatprep.subr.bf16.mxu0 %v3463_v18 }
 0x713   :  { %2664 = vmatpush2.bf16.msra.mxu1 %v3458_v19  ;;  %2705 = vmatpush2.bf16.msra.mxu0 %v3461_v21 }
 0x714   :  { %2665 = vmatprep.subr.bf16.mxu1 %v3466_v22  ;;  %2706 = vmatprep.subr.bf16.mxu0 %v3469_v23 }
 0x717   :  { %2666 = vmatpush2.bf16.msra.mxu1 %v3464_v24  ;;  %2707 = vmatpush2.bf16.msra.mxu0 %v3467_v25 }
 0x718   :  { %2667 = vmatprep.subr.bf16.mxu1 %v3472_v26  ;;  %2708 = vmatprep.subr.bf16.mxu0 %v3475_v27 }
 0x71b   :  { %2668 = vmatpush2.bf16.msra.mxu1 %v3470_v28  ;;  %2709 = vmatpush2.bf16.msra.mxu0 %v3473_v29 }
 0x71c   :  { %2669 = vmatprep.subr.bf16.mxu1 %v3478_v17  ;;  %2710 = vmatprep.subr.bf16.mxu0 %v3481_v20 }
 0x71f   :  { %2670 = vmatpush2.bf16.msra.mxu1 %v3476_v30  ;;  %2711 = vmatpush2.bf16.msra.mxu0 %v3479_v31 }
 0x720   :  { %2671 = vmatprep.subr.bf16.mxu1 %v3484_v32  ;;  %2712 = vmatprep.subr.bf16.mxu0 %v3487_v33 }
 0x723   :  { %2672 = vmatpush2.bf16.msra.mxu1 %v3482_v34  ;;  %2713 = vmatpush2.bf16.msra.mxu0 %v3485_v35 }
 0x724   :  { %2673 = vmatprep.subr.bf16.mxu1 %v3490_v36  ;;  %2714 = vmatprep.subr.bf16.mxu0 %v3493_v37 }
 0x727   :  { %2674 = vmatpush2.bf16.msra.mxu1 %v3488_v38  ;;  %2715 = vmatpush2.bf16.msra.mxu0 %v3491_v39 }
 0x728   :  { %2675 = vmatprep.subr.bf16.mxu1 %v3496_v40  ;;  %2716 = vmatprep.subr.bf16.mxu0 %v3499_v41 }
 0x72b   :  { %2676 = vmatpush2.bf16.msra.mxu1 %v3494_v42  ;;  %2717 = vmatpush2.bf16.msra.mxu0 %v3497_v43 }
 0x7ae   :  { %v2256_v49 = vpop.f32.mrf.mxu1  ;;  %v2297_v50 = vpop.f32.mrf.mxu0 }
 0x7af   :  { %v2257_v51 = vadd.f32 %v2256_v49, %v1885_v45  ;;  %v2298_v52 = vadd.f32 %v2297_v50, %v1893_v46 }
 0x7b0   :  { %v2258_v53 = vpop.f32.mrf.mxu1  ;;  %v2299_v54 = vpop.f32.mrf.mxu0 }
 0x7b1   :  { %v2259_v55 = vadd.f32 %v2258_v53, %v1889_v47  ;;  %v2300_v56 = vadd.f32 %v2299_v54, %v1897_v48  ;;  %v2304_v57 = vmax.f32 %v2257_v51, 0.0  ;;  %v2306_v58 = vmax.f32 %v2298_v52, 0.0 }
 0x7b2   :  { %v2260_v5 = vpop.f32.mrf.mxu1  ;;  %v2301_v59 = vpop.f32.mrf.mxu0 }
 0x7b3   :  { %v2305_v60 = vmax.f32 %v2259_v55, 0.0  ;;  %v2307_v61 = vmax.f32 %v2300_v56, 0.0  ;;  %v2308_v6 = vpack.c.bf16 %v2304_v57, %v2304_v57  ;;  %v2310_v11 = vpack.c.bf16 %v2306_v58, %v2306_v58 }
 0x7b4   :  { %v2261_v8 = vpop.f32.mrf.mxu1  ;;  %v2302_v62 = vpop.f32.mrf.mxu0 }
 0x7b5   :  { %v2309_v63 = vpack.c.bf16 %v2305_v60, %v2305_v60  ;;  %v2311_v0 = vpack.c.bf16 %v2307_v61, %v2307_v61 }
 0x7b7   :  { %2677 = vmatprep.mubr.bf16.mxu1 %v2309_v63  ;;  %2718 = vmatprep.mubr.bf16.mxu0 %v2311_v0 }
 0x7b8   :  { %2678 = vmatmul.mubr.bf16.vlgmr.msra.gmra.mxu1 %v2308_v6  ;;  %2719 = vmatmul.mubr.bf16.vlgmr.msra.gmra.mxu0 %v2310_v11 }
 0x878   :  { %v2679_v4 = vpop.f32.mrf.mxu1  ;;  %v2720_v9 = vpop.f32.mrf.mxu0 }
 0x879   :  { %v2680_v12 = vadd.f32 %v2679_v4, %v2318_v2 }
 0x87a   :  { %v2681_v13 = vpop.f32.mrf.mxu1  ;;  %v2722_v14 = vpop.f32.mrf.mxu0 }
 0x87b   :  { %v2721_v15 = vadd.f32 %v2720_v9, %v2680_v12  ;;  %v2682_v16 = vadd.f32 %v2681_v13, %v2322_v3 }
 0x87c   :  { %v2683_v18 = vpop.f32.mrf.mxu1  ;;  %v2724_v19 = vpop.f32.mrf.mxu0 }
 0x87d   :  { %v3042_v21 = vmul.f32 -1.442695, %v2721_v15  ;;  %v2723_v22 = vadd.f32 %v2722_v14, %v2682_v16 }
 0x87e   :  { %v2684_v23 = vpop.f32.mrf.mxu1  ;;  %v2725_v24 = vpop.f32.mrf.mxu0 }
 0x87f   :  { %3514 = vpow2.f32 %v3042_v21  ;;  %v3043_v25 = vmul.f32 -1.442695, %v2723_v22 }
 0x881   :  { %3516 = vpow2.f32 %v3043_v25 }
 0x88c   :  { %v3515_v26 = vpop.eup %3514 }
 0x88d   :  { %v2733_v7 = vadd.f32 1.0, %v3515_v26 }
 0x88e   :  { %v3517_v27 = vpop.eup %3516 }
 0x88f   :  { %v2734_v10 = vadd.f32 1.0, %v3517_v27  ;;  %3518 = vrcp.f32 %v2733_v7 }
 0x891   :  { %3520 = vrcp.f32 %v2734_v10 }
 0x89c   :  { %v3519_v28 = vpop.eup %3518 }
 0x89e   :  { %v3521_v29 = vpop.eup %3520 }
 0x89f   :  { %v2741_v17 = vcombine.low %v3519_v28, %v3521_v29 }
 0x8a1   :  { %3044 = vst.sshfl [vmem:[%s3720_s5] sm:$0x33 pattern:$0x76325410] %v2741_v17 }
 0x8a2   :  { %2759 = vsyncpa [#allocation3], 1 }
 0x8a3   :  { %2760 = vsyncpa [#allocation5], 1 }

</bundles_post_ra>
